<compile_context>
chip_gen: v7x
topology: tpu7x:2x2x1
jax: 0.10.0
libtpu: 0.0.40
codegen_flags: <defaults>
</compile_context>

<pallas_src>
import jax
import jax.numpy as jnp
from jax import lax
from jax.experimental import pallas as pl
from jax.experimental.pallas import tpu as pltpu

_HW = 4                        # spatial size of the 4x4 feature map
_POS = _HW * _HW               # 16 positions per batch element
_PAD_ROWS = 8                  # zero rows above/below each batch's 16-row slab
_SLAB = _POS + 2 * _PAD_ROWS   # 32 rows per batch (multiple of 8)

# Max |row shift| of a 3x3 tap on the flattened 4x4 map is 4 + 1 = 5; the pad
# rows must cover it, and rows inside a slab must be in p = r*4 + c order.
assert _PAD_ROWS >= _HW + 1, "pad rows must cover the largest tap shift"


def _tile_batches(batch):
    """Batch-tile size: whole batch when small, else 8 (sublane-aligned out block)."""
    return batch if batch <= 8 else 8


# ---------------------------------------------------------------------------
# Kernel bodies
# ---------------------------------------------------------------------------
def _outlogits_tail(y3, wout_ref, bout_ref, o_ref):
    """outlogits (4x4/s4 conv over the 4x4 map) + Sigmoid.

    y3:       [tb, 16, Cout] f32 activation, row p = r*4 + c inside each batch
    wout_ref: [16, Cout] f32 outlogits weight in the same row order
    bout_ref: [1, 1]  f32 conv bias
    o_ref:    [tb, 1] f32 sigmoid(logit)
    """
    g = y3 * wout_ref[...][None]                      # VPU; weight broadcast over tb
    part = jnp.sum(g, axis=1)                         # [tb, Cout]  sublane reduce (XLU)
    logit = jnp.sum(part, axis=1, keepdims=True)      # [tb, 1]     lane reduce (XLU)
    o_ref[...] = jax.nn.sigmoid(logit + bout_ref[...])


def _d_get_logits_cond_kernel(x_ref, w9_ref, scale_ref, shift_ref,
                              wout_ref, bout_ref, o_ref, acc_ref):
    """jointConv(3x3, SAME) + folded BN(eval) + LeakyReLU(0.2) + outlogits + Sigmoid.

    x_ref:   [tb, 32, Cin_pad] bf16; rows [8, 24) of each slab hold the NHWC
             channels of concat(h_code, c_code) at position p = r*4 + c,
             remaining rows are zero.
    w9_ref:  [9, Cin_pad, Cout] bf16 tap-major conv weight (k = kh*3 + kw)
    scale_ref / shift_ref: [1, Cout] f32 folded BatchNorm scale / shift
    wout_ref:[16, Cout] f32; bout_ref: [1, 1] f32; o_ref: [tb, 1] f32
    acc_ref: [tb*16, Cout] f32 VMEM accumulator scratch
    """
    tb = o_ref.shape[0]
    cin_pad = x_ref.shape[2]
    cout = wout_ref.shape[1]
    bp = tb * _POS

    # (r, c) of every output position, lane-broadcast to the LHS width (hoisted).
    pos = lax.broadcasted_iota(jnp.int32, (_POS, cin_pad), 0)
    r = pos >> 2
    c = pos & 3

    def tap_lhs(dh, dw):
        shift = dh * _HW + dw                               # static, |shift| <= 5
        xs = x_ref[:, pl.ds(_PAD_ROWS + shift, _POS), :]    # [tb, 16, Cin_pad] bf16
        if dw != 0:
            # Column-edge taps can alias a neighbouring row of the same 4x4 map:
            # zero the LHS rows (row-edge taps with dw == 0 land in the zero pad
            # rows and need no mask at all).
            valid = ((r + dh >= 0) & (r + dh < _HW) &
                     (c + dw >= 0) & (c + dw < _HW))
            xs = jnp.where(jnp.broadcast_to(valid[None], xs.shape),
                           xs, jnp.zeros_like(xs))
        return xs.reshape(bp, cin_pad)

    # Centre tap initialises the accumulator; the other 8 accumulate in place.
    acc_ref[...] = jnp.dot(tap_lhs(0, 0), w9_ref[4],
                           preferred_element_type=jnp.float32)
    for dh in (-1, 0, 1):
        for dw in (-1, 0, 1):
            if dh == 0 and dw == 0:
                continue
            k = (dh + 1) * 3 + (dw + 1)
            acc_ref[...] += jnp.dot(tap_lhs(dh, dw), w9_ref[k],
                                    preferred_element_type=jnp.float32)

    # Folded BatchNorm (eval mode) + LeakyReLU(0.2), all f32 on the VPU.
    y = acc_ref[...] * scale_ref[...] + shift_ref[...]
    y = jnp.maximum(y, 0.2 * y)

    _outlogits_tail(y.reshape(tb, _POS, cout), wout_ref, bout_ref, o_ref)


def _d_get_logits_uncond_kernel(x_ref, wout_ref, bout_ref, o_ref):
    """bcondition=False path: outlogits + Sigmoid only (f32 activation)."""
    _outlogits_tail(x_ref[...], wout_ref, bout_ref, o_ref)


# ---------------------------------------------------------------------------
# Module
# ---------------------------------------------------------------------------
class DGetLogitsPallas:
    """Pallas TPU implementation of AttnGAN++ D_GET_LOGITS (forward, eval mode)."""

    def __init__(self, ndf, nef, bcondition=False, key=None):
        self.df_dim = ndf
        self.ef_dim = nef
        self.bcondition = bcondition
        key = jax.random.PRNGKey(42) if key is None else key
        k1, k2, k3, k4, k5 = jax.random.split(key, 5)

        cout = ndf * 8
        cin = ndf * 8 + nef
        self.cout = cout
        self.cin = cin
        self.cin_pad = ((cin + 127) // 128) * 128     # lane-dense K for the MXU

        if bcondition:
            # Block3x3_leakRelu = conv3x3(no bias) + BatchNorm2d(eval) + LeakyReLU(0.2)
            self.w_joint = 0.05 * jax.random.normal(k1, (cout, cin, 3, 3), jnp.float32)
            self.bn_gamma = 1.0 + 0.1 * jax.random.normal(k2, (cout,), jnp.float32)
            self.bn_beta = 0.1 * jax.random.normal(k3, (cout,), jnp.float32)
            self.bn_mean = jnp.zeros((cout,), jnp.float32)
            self.bn_var = jnp.ones((cout,), jnp.float32)
            self.bn_eps = 1e-5
            # Tap-major [9, Cin_pad, Cout] bf16 conv weight for the in-kernel conv.
            w9 = jnp.transpose(self.w_joint, (2, 3, 1, 0)).reshape(9, cin, cout)
            w9 = jnp.pad(w9, ((0, 0), (0, self.cin_pad - cin), (0, 0)))
            self.w9_bf16 = w9.astype(jnp.bfloat16)
            # Folded BatchNorm scale/shift (f32 epilogue).
            scale = self.bn_gamma / jnp.sqrt(self.bn_var + self.bn_eps)
            self.bn_scale = scale.reshape(1, cout)
            self.bn_shift = (self.bn_beta - self.bn_mean * scale).reshape(1, cout)

        # outlogits = Conv2d(ndf*8, 1, kernel=4, stride=4) + Sigmoid
        self.w_out = 0.05 * jax.random.normal(k4, (1, cout, 4, 4), jnp.float32)
        self.b_out = 0.05 * jax.random.normal(k5, (1,), jnp.float32)
        # Pre-permuted to NHWC row order: row p = r*4 + c  ->  w_out[0, :, r, c].
        self.w_out_rows = jnp.transpose(self.w_out[0], (1, 2, 0)).reshape(_POS, cout)
        self.b_out2d = self.b_out.reshape(1, 1)

        self._fwd_cond = jax.jit(self._forward_cond)
        self._fwd_uncond = jax.jit(self._forward_uncond)

    # ---- pallas_call builders ------------------------------------------------
    def _cond_call(self, x, tb, b_pad):
        cout, cin_pad = self.cout, self.cin_pad
        flops = 2 * b_pad * _POS * 9 * cin_pad * cout + 6 * b_pad * _POS * cout
        bytes_accessed = (x.size * 2 + self.w9_bf16.size * 2
                          + 4 * (2 * cout + _POS * cout + 1 + b_pad))
        return pl.pallas_call(
            _d_get_logits_cond_kernel,
            out_shape=jax.ShapeDtypeStruct((b_pad, 1), jnp.float32),
            grid=(b_pad // tb,),
            in_specs=[
                pl.BlockSpec((tb, _SLAB, cin_pad), lambda i: (i, 0, 0)),   # x tiles
                pl.BlockSpec((9, cin_pad, cout), lambda i: (0, 0, 0)),     # resident
                pl.BlockSpec((1, cout), lambda i: (0, 0)),                 # resident
                pl.BlockSpec((1, cout), lambda i: (0, 0)),                 # resident
                pl.BlockSpec((_POS, cout), lambda i: (0, 0)),              # resident
                pl.BlockSpec((1, 1), lambda i: (0, 0)),                    # resident
            ],
            out_specs=pl.BlockSpec((tb, 1), lambda i: (i, 0)),
            scratch_shapes=[pltpu.VMEM((tb * _POS, cout), jnp.float32)],
            compiler_params=pltpu.CompilerParams(
                dimension_semantics=("parallel",),      # v7x: 2 TCs split the tiles
                vmem_limit_bytes=32 << 20),             # safe on v5e/v6e/v7x
            cost_estimate=pl.CostEstimate(
                flops=int(flops), transcendentals=int(b_pad),
                bytes_accessed=int(bytes_accessed)),
        )(x, self.w9_bf16, self.bn_scale, self.bn_shift,
          self.w_out_rows, self.b_out2d)

    def _uncond_call(self, x, tb, b_pad):
        cout = self.cout
        return pl.pallas_call(
            _d_get_logits_uncond_kernel,
            out_shape=jax.ShapeDtypeStruct((b_pad, 1), jnp.float32),
            grid=(b_pad // tb,),
            in_specs=[
                pl.BlockSpec((tb, _POS, cout), lambda i: (i, 0, 0)),
                pl.BlockSpec((_POS, cout), lambda i: (0, 0)),
                pl.BlockSpec((1, 1), lambda i: (0, 0)),
            ],
            out_specs=pl.BlockSpec((tb, 1), lambda i: (i, 0)),
            compiler_params=pltpu.CompilerParams(
                dimension_semantics=("parallel",)),
        )(x, self.w_out_rows, self.b_out2d)

    # ---- forward implementations (traced under jit; minimal host glue) -------
    def _forward_cond(self, h_code, c_code):
        B = h_code.shape[0]
        assert h_code.shape[1:] == (self.cout, _HW, _HW)
        tb = _tile_batches(B)
        b_pad = pl.cdiv(B, tb) * tb
        # NHWC rows: row p = r*4 + c inside each batch's slab.
        h_rows = jnp.transpose(h_code, (0, 2, 3, 1)).reshape(B, _POS, self.cout)
        c_rows = jnp.broadcast_to(c_code[:, None, :], (B, _POS, self.ef_dim))
        x = jnp.concatenate([h_rows, c_rows], axis=-1).astype(jnp.bfloat16)
        # One pad: batch-tile pad + per-batch zero slab rows + lane pad of Cin.
        x = jnp.pad(x, ((0, b_pad - B), (_PAD_ROWS, _PAD_ROWS),
                        (0, self.cin_pad - self.cin)))
        out = self._cond_call(x, tb, b_pad)
        return out[:B, 0]                                   # output.view(-1)

    def _forward_uncond(self, h_code):
        B = h_code.shape[0]
        assert h_code.shape[1:] == (self.cout, _HW, _HW)
        tb = _tile_batches(B)
        b_pad = pl.cdiv(B, tb) * tb
        h_rows = jnp.transpose(h_code, (0, 2, 3, 1)).reshape(B, _POS, self.cout)
        h_rows = jnp.pad(h_rows, ((0, b_pad - B), (0, 0), (0, 0)))
        out = self._uncond_call(h_rows, tb, b_pad)
        return out[:B, 0]

    def __call__(self, h_code, c_code=None):
        if self.bcondition and c_code is not None:
            return self._fwd_cond(h_code, c_code)
        return self._fwd_uncond(h_code)


# ---------------------------------------------------------------------------
# Pure-JAX reference (mirrors the PyTorch forward; same bf16 matmul inputs)
# ---------------------------------------------------------------------------
def _reference(mod: DGetLogitsPallas, h_code, c_code=None):
    B = h_code.shape[0]
    if mod.bcondition and c_code is not None:
        c = jnp.broadcast_to(c_code.reshape(B, mod.ef_dim, 1, 1), (B, mod.ef_dim, 4, 4))
        h_c = jnp.concatenate([h_code, c], axis=1)
        y = lax.conv_general_dilated(
            h_c.astype(jnp.bfloat16), mod.w_joint.astype(jnp.bfloat16),
            (1, 1), "SAME", dimension_numbers=("NCHW", "OIHW", "NCHW"),
            preferred_element_type=jnp.float32)
        scale = mod.bn_gamma / jnp.sqrt(mod.bn_var + mod.bn_eps)
        shift = mod.bn_beta - mod.bn_mean * scale
        y = y * scale[None, :, None, None] + shift[None, :, None, None]
        h_c_code = jnp.maximum(y, 0.2 * y)                  # LeakyReLU(0.2)
    else:
        h_c_code = h_code
    # 4x4/s4 conv over a 4x4 map == full f32 reduction per batch element.
    logit = jnp.sum(h_c_code * mod.w_out[0][None], axis=(1, 2, 3)) + mod.b_out[0]
    return jax.nn.sigmoid(logit)


if __name__ == "__main__":
    B, ndf, nef = 2, 4, 8          # ndf*8 = 32 channels, 4x4 spatial map
    key = jax.random.PRNGKey(0)
    kh_key, kc_key = jax.random.split(key)
    h_code = jax.random.normal(kh_key, (B, ndf * 8, 4, 4), jnp.float32)
    c_code = jax.random.normal(kc_key, (B, nef), jnp.float32)

    # Conditional path (bcondition=True): jointConv + outlogits fused in one kernel.
    mod_cond = DGetLogitsPallas(ndf, nef, bcondition=True)
    out_cond = jax.block_until_ready(mod_cond(h_code, c_code))
    ref_cond = _reference(mod_cond, h_code, c_code)
    assert out_cond.shape == (B,)
    assert jnp.allclose(out_cond, ref_cond, atol=1e-4, rtol=1e-4), (out_cond, ref_cond)

    # Unconditional path (bcondition=False): outlogits only.
    mod_uncond = DGetLogitsPallas(ndf, nef, bcondition=False)
    out_uncond = jax.block_until_ready(mod_uncond(h_code))
    ref_uncond = _reference(mod_uncond, h_code)
    assert out_uncond.shape == (B,)
    assert jnp.allclose(out_uncond, ref_uncond, atol=1e-4, rtol=1e-4), (out_uncond, ref_uncond)

    print("KERNEL_OK")
</pallas_src>

<mosaic_0001>
module attributes {stable_mosaic.version = 11 : i64} {
  func.func @_d_get_logits_cond_kernel(%arg0: i32, %arg1: memref<2x32x128xbf16, #tpu.memory_space<vmem>>, %arg2: memref<9x128x32xbf16, #tpu.memory_space<vmem>>, %arg3: memref<1x32xf32, #tpu.memory_space<vmem>>, %arg4: memref<1x32xf32, #tpu.memory_space<vmem>>, %arg5: memref<16x32xf32, #tpu.memory_space<vmem>>, %arg6: memref<1x1xf32, #tpu.memory_space<vmem>>, %arg7: memref<2x1xf32, #tpu.memory_space<vmem>>, %arg8: memref<32x32xf32, #tpu.memory_space<vmem>>) attributes {dimension_semantics = [#tpu.dimension_semantics<parallel>], iteration_bounds = array<i64: 1>, scalar_prefetch = 0 : i64, scratch_operands = 1 : i64, tpu.core_type = #tpu.core_type<tc>, window_params = [{transform_indices = @transform_0, window_bounds = array<i64: 2, 32, 128>}, {pipeline_mode = #tpu.pipeline_mode<synchronous>, transform_indices = @transform_1, window_bounds = array<i64: 9, 128, 32>}, {pipeline_mode = #tpu.pipeline_mode<synchronous>, transform_indices = @transform_2, window_bounds = array<i64: 1, 32>}, {pipeline_mode = #tpu.pipeline_mode<synchronous>, transform_indices = @transform_3, window_bounds = array<i64: 1, 32>}, {pipeline_mode = #tpu.pipeline_mode<synchronous>, transform_indices = @transform_4, window_bounds = array<i64: 16, 32>}, {pipeline_mode = #tpu.pipeline_mode<synchronous>, transform_indices = @transform_5, window_bounds = array<i64: 1, 1>}, {transform_indices = @transform_6, window_bounds = array<i64: 2, 1>}]} {
    %0 = tpu.iota {dimensions = array<i32: 0>} : vector<16x128xi32>
    %c2_i32 = arith.constant 2 : i32
    %1 = vector.broadcast %c2_i32 : i32 to vector<16x128xi32>
    %2 = arith.shrsi %0, %1 : vector<16x128xi32>
    %c3_i32 = arith.constant 3 : i32
    %3 = vector.broadcast %c3_i32 : i32 to vector<16x128xi32>
    %4 = arith.andi %0, %3 : vector<16x128xi32>
    %c0 = arith.constant 0 : index
    %c8 = arith.constant 8 : index
    %c0_0 = arith.constant 0 : index
    %5 = vector.load %arg1[%c0, %c8, %c0_0] : memref<2x32x128xbf16, #tpu.memory_space<vmem>>, vector<2x16x128xbf16>
    %6 = vector.shape_cast %5 : vector<2x16x128xbf16> to vector<32x128xbf16>
    %c4 = arith.constant 4 : index
    %c0_1 = arith.constant 0 : index
    %c0_2 = arith.constant 0 : index
    %7 = vector.load %arg2[%c4, %c0_1, %c0_2] : memref<9x128x32xbf16, #tpu.memory_space<vmem>>, vector<1x128x32xbf16>
    %8 = vector.shape_cast %7 : vector<1x128x32xbf16> to vector<128x32xbf16>
    %cst = arith.constant dense<0.000000e+00> : vector<32x32xf32>
    %9 = tpu.matmul %6, %8, %cst {dimension_numbers = #tpu.dot_dimension_numbers<[1], [0], [0], [1], [0, 0, 1, 1], [], []>} : vector<32x128xbf16>, vector<128x32xbf16>, vector<32x32xf32> -> vector<32x32xf32>
    %c0_3 = arith.constant 0 : index
    %c0_4 = arith.constant 0 : index
    %10 = vector.load %arg8[%c0_3, %c0_4] : memref<32x32xf32, #tpu.memory_space<vmem>>, vector<32x32xf32>
    tpu.vector_store %arg8[%c0_3, %c0_4], %9 {strides = array<i32>} : memref<32x32xf32, #tpu.memory_space<vmem>>, vector<32x32xf32>,
    %c0_5 = arith.constant 0 : index
    %c0_6 = arith.constant 0 : index
    %11 = vector.load %arg8[%c0_5, %c0_6] : memref<32x32xf32, #tpu.memory_space<vmem>>, vector<32x32xf32>
    %c0_7 = arith.constant 0 : index
    %c3 = arith.constant 3 : index
    %c0_8 = arith.constant 0 : index
    %12 = vector.load %arg1[%c0_7, %c3, %c0_8] : memref<2x32x128xbf16, #tpu.memory_space<vmem>>, vector<2x16x128xbf16>
    %c-1_i32 = arith.constant -1 : i32
    %13 = vector.broadcast %c-1_i32 : i32 to vector<16x128xi32>
    %14 = arith.addi %2, %13 : vector<16x128xi32>
    %c0_i32 = arith.constant 0 : i32
    %15 = vector.broadcast %c0_i32 : i32 to vector<16x128xi32>
    %16 = arith.cmpi sge, %14, %15 : vector<16x128xi32>
    %c-1_i32_9 = arith.constant -1 : i32
    %17 = vector.broadcast %c-1_i32_9 : i32 to vector<16x128xi32>
    %18 = arith.addi %2, %17 : vector<16x128xi32>
    %c4_i32 = arith.constant 4 : i32
    %19 = vector.broadcast %c4_i32 : i32 to vector<16x128xi32>
    %20 = arith.cmpi slt, %18, %19 : vector<16x128xi32>
    %21 = arith.andi %16, %20 : vector<16x128xi1>
    %c-1_i32_10 = arith.constant -1 : i32
    %22 = vector.broadcast %c-1_i32_10 : i32 to vector<16x128xi32>
    %23 = arith.addi %4, %22 : vector<16x128xi32>
    %c0_i32_11 = arith.constant 0 : i32
    %24 = vector.broadcast %c0_i32_11 : i32 to vector<16x128xi32>
    %25 = arith.cmpi sge, %23, %24 : vector<16x128xi32>
    %26 = arith.andi %21, %25 : vector<16x128xi1>
    %c-1_i32_12 = arith.constant -1 : i32
    %27 = vector.broadcast %c-1_i32_12 : i32 to vector<16x128xi32>
    %28 = arith.addi %4, %27 : vector<16x128xi32>
    %c4_i32_13 = arith.constant 4 : i32
    %29 = vector.broadcast %c4_i32_13 : i32 to vector<16x128xi32>
    %30 = arith.cmpi slt, %28, %29 : vector<16x128xi32>
    %31 = arith.andi %26, %30 : vector<16x128xi1>
    %32 = vector.shape_cast %31 : vector<16x128xi1> to vector<1x16x128xi1>
    %33 = vector.shape_cast %32 : vector<1x16x128xi1> to vector<1x16x128xi1>
    %34 = vector.broadcast %33 : vector<1x16x128xi1> to vector<2x16x128xi1>
    %cst_14 = arith.constant 0.000000e+00 : bf16
    %35 = vector.broadcast %cst_14 : bf16 to vector<2x16x128xbf16>
    %36 = arith.select %34, %12, %35 : vector<2x16x128xi1>, vector<2x16x128xbf16>
    %37 = vector.shape_cast %36 : vector<2x16x128xbf16> to vector<32x128xbf16>
    %c0_15 = arith.constant 0 : index
    %c0_16 = arith.constant 0 : index
    %c0_17 = arith.constant 0 : index
    %38 = vector.load %arg2[%c0_15, %c0_16, %c0_17] : memref<9x128x32xbf16, #tpu.memory_space<vmem>>, vector<1x128x32xbf16>
    %39 = vector.shape_cast %38 : vector<1x128x32xbf16> to vector<128x32xbf16>
    %cst_18 = arith.constant dense<0.000000e+00> : vector<32x32xf32>
    %40 = tpu.matmul %37, %39, %cst_18 {dimension_numbers = #tpu.dot_dimension_numbers<[1], [0], [0], [1], [0, 0, 1, 1], [], []>} : vector<32x128xbf16>, vector<128x32xbf16>, vector<32x32xf32> -> vector<32x32xf32>
    %41 = arith.addf %11, %40 : vector<32x32xf32>
    %c0_19 = arith.constant 0 : index
    %c0_20 = arith.constant 0 : index
    %42 = vector.load %arg8[%c0_19, %c0_20] : memref<32x32xf32, #tpu.memory_space<vmem>>, vector<32x32xf32>
    tpu.vector_store %arg8[%c0_19, %c0_20], %41 {strides = array<i32>} : memref<32x32xf32, #tpu.memory_space<vmem>>, vector<32x32xf32>,
    %c0_21 = arith.constant 0 : index
    %c0_22 = arith.constant 0 : index
    %43 = vector.load %arg8[%c0_21, %c0_22] : memref<32x32xf32, #tpu.memory_space<vmem>>, vector<32x32xf32>
    %c0_23 = arith.constant 0 : index
    %c4_24 = arith.constant 4 : index
    %c0_25 = arith.constant 0 : index
    %44 = vector.load %arg1[%c0_23, %c4_24, %c0_25] : memref<2x32x128xbf16, #tpu.memory_space<vmem>>, vector<2x16x128xbf16>
    %45 = vector.shape_cast %44 : vector<2x16x128xbf16> to vector<32x128xbf16>
    %c1 = arith.constant 1 : index
    %c0_26 = arith.constant 0 : index
    %c0_27 = arith.constant 0 : index
    %46 = vector.load %arg2[%c1, %c0_26, %c0_27] : memref<9x128x32xbf16, #tpu.memory_space<vmem>>, vector<1x128x32xbf16>
    %47 = vector.shape_cast %46 : vector<1x128x32xbf16> to vector<128x32xbf16>
    %cst_28 = arith.constant dense<0.000000e+00> : vector<32x32xf32>
    %48 = tpu.matmul %45, %47, %cst_28 {dimension_numbers = #tpu.dot_dimension_numbers<[1], [0], [0], [1], [0, 0, 1, 1], [], []>} : vector<32x128xbf16>, vector<128x32xbf16>, vector<32x32xf32> -> vector<32x32xf32>
    %49 = arith.addf %43, %48 : vector<32x32xf32>
    %c0_29 = arith.constant 0 : index
    %c0_30 = arith.constant 0 : index
    %50 = vector.load %arg8[%c0_29, %c0_30] : memref<32x32xf32, #tpu.memory_space<vmem>>, vector<32x32xf32>
    tpu.vector_store %arg8[%c0_29, %c0_30], %49 {strides = array<i32>} : memref<32x32xf32, #tpu.memory_space<vmem>>, vector<32x32xf32>,
    %c0_31 = arith.constant 0 : index
    %c0_32 = arith.constant 0 : index
    %51 = vector.load %arg8[%c0_31, %c0_32] : memref<32x32xf32, #tpu.memory_space<vmem>>, vector<32x32xf32>
    %c0_33 = arith.constant 0 : index
    %c5 = arith.constant 5 : index
    %c0_34 = arith.constant 0 : index
    %52 = vector.load %arg1[%c0_33, %c5, %c0_34] : memref<2x32x128xbf16, #tpu.memory_space<vmem>>, vector<2x16x128xbf16>
    %c-1_i32_35 = arith.constant -1 : i32
    %53 = vector.broadcast %c-1_i32_35 : i32 to vector<16x128xi32>
    %54 = arith.addi %2, %53 : vector<16x128xi32>
    %c0_i32_36 = arith.constant 0 : i32
    %55 = vector.broadcast %c0_i32_36 : i32 to vector<16x128xi32>
    %56 = arith.cmpi sge, %54, %55 : vector<16x128xi32>
    %c-1_i32_37 = arith.constant -1 : i32
    %57 = vector.broadcast %c-1_i32_37 : i32 to vector<16x128xi32>
    %58 = arith.addi %2, %57 : vector<16x128xi32>
    %c4_i32_38 = arith.constant 4 : i32
    %59 = vector.broadcast %c4_i32_38 : i32 to vector<16x128xi32>
    %60 = arith.cmpi slt, %58, %59 : vector<16x128xi32>
    %61 = arith.andi %56, %60 : vector<16x128xi1>
    %c1_i32 = arith.constant 1 : i32
    %62 = vector.broadcast %c1_i32 : i32 to vector<16x128xi32>
    %63 = arith.addi %4, %62 : vector<16x128xi32>
    %c0_i32_39 = arith.constant 0 : i32
    %64 = vector.broadcast %c0_i32_39 : i32 to vector<16x128xi32>
    %65 = arith.cmpi sge, %63, %64 : vector<16x128xi32>
    %66 = arith.andi %61, %65 : vector<16x128xi1>
    %c1_i32_40 = arith.constant 1 : i32
    %67 = vector.broadcast %c1_i32_40 : i32 to vector<16x128xi32>
    %68 = arith.addi %4, %67 : vector<16x128xi32>
    %c4_i32_41 = arith.constant 4 : i32
    %69 = vector.broadcast %c4_i32_41 : i32 to vector<16x128xi32>
    %70 = arith.cmpi slt, %68, %69 : vector<16x128xi32>
    %71 = arith.andi %66, %70 : vector<16x128xi1>
    %72 = vector.shape_cast %71 : vector<16x128xi1> to vector<1x16x128xi1>
    %73 = vector.shape_cast %72 : vector<1x16x128xi1> to vector<1x16x128xi1>
    %74 = vector.broadcast %73 : vector<1x16x128xi1> to vector<2x16x128xi1>
    %cst_42 = arith.constant 0.000000e+00 : bf16
    %75 = vector.broadcast %cst_42 : bf16 to vector<2x16x128xbf16>
    %76 = arith.select %74, %52, %75 : vector<2x16x128xi1>, vector<2x16x128xbf16>
    %77 = vector.shape_cast %76 : vector<2x16x128xbf16> to vector<32x128xbf16>
    %c2 = arith.constant 2 : index
    %c0_43 = arith.constant 0 : index
    %c0_44 = arith.constant 0 : index
    %78 = vector.load %arg2[%c2, %c0_43, %c0_44] : memref<9x128x32xbf16, #tpu.memory_space<vmem>>, vector<1x128x32xbf16>
    %79 = vector.shape_cast %78 : vector<1x128x32xbf16> to vector<128x32xbf16>
    %cst_45 = arith.constant dense<0.000000e+00> : vector<32x32xf32>
    %80 = tpu.matmul %77, %79, %cst_45 {dimension_numbers = #tpu.dot_dimension_numbers<[1], [0], [0], [1], [0, 0, 1, 1], [], []>} : vector<32x128xbf16>, vector<128x32xbf16>, vector<32x32xf32> -> vector<32x32xf32>
    %81 = arith.addf %51, %80 : vector<32x32xf32>
    %c0_46 = arith.constant 0 : index
    %c0_47 = arith.constant 0 : index
    %82 = vector.load %arg8[%c0_46, %c0_47] : memref<32x32xf32, #tpu.memory_space<vmem>>, vector<32x32xf32>
    tpu.vector_store %arg8[%c0_46, %c0_47], %81 {strides = array<i32>} : memref<32x32xf32, #tpu.memory_space<vmem>>, vector<32x32xf32>,
    %c0_48 = arith.constant 0 : index
    %c0_49 = arith.constant 0 : index
    %83 = vector.load %arg8[%c0_48, %c0_49] : memref<32x32xf32, #tpu.memory_space<vmem>>, vector<32x32xf32>
    %c0_50 = arith.constant 0 : index
    %c7 = arith.constant 7 : index
    %c0_51 = arith.constant 0 : index
    %84 = vector.load %arg1[%c0_50, %c7, %c0_51] : memref<2x32x128xbf16, #tpu.memory_space<vmem>>, vector<2x16x128xbf16>
    %c0_i32_52 = arith.constant 0 : i32
    %85 = vector.broadcast %c0_i32_52 : i32 to vector<16x128xi32>
    %86 = arith.addi %2, %85 : vector<16x128xi32>
    %c0_i32_53 = arith.constant 0 : i32
    %87 = vector.broadcast %c0_i32_53 : i32 to vector<16x128xi32>
    %88 = arith.cmpi sge, %86, %87 : vector<16x128xi32>
    %c0_i32_54 = arith.constant 0 : i32
    %89 = vector.broadcast %c0_i32_54 : i32 to vector<16x128xi32>
    %90 = arith.addi %2, %89 : vector<16x128xi32>
    %c4_i32_55 = arith.constant 4 : i32
    %91 = vector.broadcast %c4_i32_55 : i32 to vector<16x128xi32>
    %92 = arith.cmpi slt, %90, %91 : vector<16x128xi32>
    %93 = arith.andi %88, %92 : vector<16x128xi1>
    %c-1_i32_56 = arith.constant -1 : i32
    %94 = vector.broadcast %c-1_i32_56 : i32 to vector<16x128xi32>
    %95 = arith.addi %4, %94 : vector<16x128xi32>
    %c0_i32_57 = arith.constant 0 : i32
    %96 = vector.broadcast %c0_i32_57 : i32 to vector<16x128xi32>
    %97 = arith.cmpi sge, %95, %96 : vector<16x128xi32>
    %98 = arith.andi %93, %97 : vector<16x128xi1>
    %c-1_i32_58 = arith.constant -1 : i32
    %99 = vector.broadcast %c-1_i32_58 : i32 to vector<16x128xi32>
    %100 = arith.addi %4, %99 : vector<16x128xi32>
    %c4_i32_59 = arith.constant 4 : i32
    %101 = vector.broadcast %c4_i32_59 : i32 to vector<16x128xi32>
    %102 = arith.cmpi slt, %100, %101 : vector<16x128xi32>
    %103 = arith.andi %98, %102 : vector<16x128xi1>
    %104 = vector.shape_cast %103 : vector<16x128xi1> to vector<1x16x128xi1>
    %105 = vector.shape_cast %104 : vector<1x16x128xi1> to vector<1x16x128xi1>
    %106 = vector.broadcast %105 : vector<1x16x128xi1> to vector<2x16x128xi1>
    %cst_60 = arith.constant 0.000000e+00 : bf16
    %107 = vector.broadcast %cst_60 : bf16 to vector<2x16x128xbf16>
    %108 = arith.select %106, %84, %107 : vector<2x16x128xi1>, vector<2x16x128xbf16>
    %109 = vector.shape_cast %108 : vector<2x16x128xbf16> to vector<32x128xbf16>
    %c3_61 = arith.constant 3 : index
    %c0_62 = arith.constant 0 : index
    %c0_63 = arith.constant 0 : index
    %110 = vector.load %arg2[%c3_61, %c0_62, %c0_63] : memref<9x128x32xbf16, #tpu.memory_space<vmem>>, vector<1x128x32xbf16>
    %111 = vector.shape_cast %110 : vector<1x128x32xbf16> to vector<128x32xbf16>
    %cst_64 = arith.constant dense<0.000000e+00> : vector<32x32xf32>
    %112 = tpu.matmul %109, %111, %cst_64 {dimension_numbers = #tpu.dot_dimension_numbers<[1], [0], [0], [1], [0, 0, 1, 1], [], []>} : vector<32x128xbf16>, vector<128x32xbf16>, vector<32x32xf32> -> vector<32x32xf32>
    %113 = arith.addf %83, %112 : vector<32x32xf32>
    %c0_65 = arith.constant 0 : index
    %c0_66 = arith.constant 0 : index
    %114 = vector.load %arg8[%c0_65, %c0_66] : memref<32x32xf32, #tpu.memory_space<vmem>>, vector<32x32xf32>
    tpu.vector_store %arg8[%c0_65, %c0_66], %113 {strides = array<i32>} : memref<32x32xf32, #tpu.memory_space<vmem>>, vector<32x32xf32>,
    %c0_67 = arith.constant 0 : index
    %c0_68 = arith.constant 0 : index
    %115 = vector.load %arg8[%c0_67, %c0_68] : memref<32x32xf32, #tpu.memory_space<vmem>>, vector<32x32xf32>
    %c0_69 = arith.constant 0 : index
    %c9 = arith.constant 9 : index
    %c0_70 = arith.constant 0 : index
    %116 = vector.load %arg1[%c0_69, %c9, %c0_70] : memref<2x32x128xbf16, #tpu.memory_space<vmem>>, vector<2x16x128xbf16>
    %c0_i32_71 = arith.constant 0 : i32
    %117 = vector.broadcast %c0_i32_71 : i32 to vector<16x128xi32>
    %118 = arith.addi %2, %117 : vector<16x128xi32>
    %c0_i32_72 = arith.constant 0 : i32
    %119 = vector.broadcast %c0_i32_72 : i32 to vector<16x128xi32>
    %120 = arith.cmpi sge, %118, %119 : vector<16x128xi32>
    %c0_i32_73 = arith.constant 0 : i32
    %121 = vector.broadcast %c0_i32_73 : i32 to vector<16x128xi32>
    %122 = arith.addi %2, %121 : vector<16x128xi32>
    %c4_i32_74 = arith.constant 4 : i32
    %123 = vector.broadcast %c4_i32_74 : i32 to vector<16x128xi32>
    %124 = arith.cmpi slt, %122, %123 : vector<16x128xi32>
    %125 = arith.andi %120, %124 : vector<16x128xi1>
    %c1_i32_75 = arith.constant 1 : i32
    %126 = vector.broadcast %c1_i32_75 : i32 to vector<16x128xi32>
    %127 = arith.addi %4, %126 : vector<16x128xi32>
    %c0_i32_76 = arith.constant 0 : i32
    %128 = vector.broadcast %c0_i32_76 : i32 to vector<16x128xi32>
    %129 = arith.cmpi sge, %127, %128 : vector<16x128xi32>
    %130 = arith.andi %125, %129 : vector<16x128xi1>
    %c1_i32_77 = arith.constant 1 : i32
    %131 = vector.broadcast %c1_i32_77 : i32 to vector<16x128xi32>
    %132 = arith.addi %4, %131 : vector<16x128xi32>
    %c4_i32_78 = arith.constant 4 : i32
    %133 = vector.broadcast %c4_i32_78 : i32 to vector<16x128xi32>
    %134 = arith.cmpi slt, %132, %133 : vector<16x128xi32>
    %135 = arith.andi %130, %134 : vector<16x128xi1>
    %136 = vector.shape_cast %135 : vector<16x128xi1> to vector<1x16x128xi1>
    %137 = vector.shape_cast %136 : vector<1x16x128xi1> to vector<1x16x128xi1>
    %138 = vector.broadcast %137 : vector<1x16x128xi1> to vector<2x16x128xi1>
    %cst_79 = arith.constant 0.000000e+00 : bf16
    %139 = vector.broadcast %cst_79 : bf16 to vector<2x16x128xbf16>
    %140 = arith.select %138, %116, %139 : vector<2x16x128xi1>, vector<2x16x128xbf16>
    %141 = vector.shape_cast %140 : vector<2x16x128xbf16> to vector<32x128xbf16>
    %c5_80 = arith.constant 5 : index
    %c0_81 = arith.constant 0 : index
    %c0_82 = arith.constant 0 : index
    %142 = vector.load %arg2[%c5_80, %c0_81, %c0_82] : memref<9x128x32xbf16, #tpu.memory_space<vmem>>, vector<1x128x32xbf16>
    %143 = vector.shape_cast %142 : vector<1x128x32xbf16> to vector<128x32xbf16>
    %cst_83 = arith.constant dense<0.000000e+00> : vector<32x32xf32>
    %144 = tpu.matmul %141, %143, %cst_83 {dimension_numbers = #tpu.dot_dimension_numbers<[1], [0], [0], [1], [0, 0, 1, 1], [], []>} : vector<32x128xbf16>, vector<128x32xbf16>, vector<32x32xf32> -> vector<32x32xf32>
    %145 = arith.addf %115, %144 : vector<32x32xf32>
    %c0_84 = arith.constant 0 : index
    %c0_85 = arith.constant 0 : index
    %146 = vector.load %arg8[%c0_84, %c0_85] : memref<32x32xf32, #tpu.memory_space<vmem>>, vector<32x32xf32>
    tpu.vector_store %arg8[%c0_84, %c0_85], %145 {strides = array<i32>} : memref<32x32xf32, #tpu.memory_space<vmem>>, vector<32x32xf32>,
    %c0_86 = arith.constant 0 : index
    %c0_87 = arith.constant 0 : index
    %147 = vector.load %arg8[%c0_86, %c0_87] : memref<32x32xf32, #tpu.memory_space<vmem>>, vector<32x32xf32>
    %c0_88 = arith.constant 0 : index
    %c11 = arith.constant 11 : index
    %c0_89 = arith.constant 0 : index
    %148 = vector.load %arg1[%c0_88, %c11, %c0_89] : memref<2x32x128xbf16, #tpu.memory_space<vmem>>, vector<2x16x128xbf16>
    %c1_i32_90 = arith.constant 1 : i32
    %149 = vector.broadcast %c1_i32_90 : i32 to vector<16x128xi32>
    %150 = arith.addi %2, %149 : vector<16x128xi32>
    %c0_i32_91 = arith.constant 0 : i32
    %151 = vector.broadcast %c0_i32_91 : i32 to vector<16x128xi32>
    %152 = arith.cmpi sge, %150, %151 : vector<16x128xi32>
    %c1_i32_92 = arith.constant 1 : i32
    %153 = vector.broadcast %c1_i32_92 : i32 to vector<16x128xi32>
    %154 = arith.addi %2, %153 : vector<16x128xi32>
    %c4_i32_93 = arith.constant 4 : i32
    %155 = vector.broadcast %c4_i32_93 : i32 to vector<16x128xi32>
    %156 = arith.cmpi slt, %154, %155 : vector<16x128xi32>
    %157 = arith.andi %152, %156 : vector<16x128xi1>
    %c-1_i32_94 = arith.constant -1 : i32
    %158 = vector.broadcast %c-1_i32_94 : i32 to vector<16x128xi32>
    %159 = arith.addi %4, %158 : vector<16x128xi32>
    %c0_i32_95 = arith.constant 0 : i32
    %160 = vector.broadcast %c0_i32_95 : i32 to vector<16x128xi32>
    %161 = arith.cmpi sge, %159, %160 : vector<16x128xi32>
    %162 = arith.andi %157, %161 : vector<16x128xi1>
    %c-1_i32_96 = arith.constant -1 : i32
    %163 = vector.broadcast %c-1_i32_96 : i32 to vector<16x128xi32>
    %164 = arith.addi %4, %163 : vector<16x128xi32>
    %c4_i32_97 = arith.constant 4 : i32
    %165 = vector.broadcast %c4_i32_97 : i32 to vector<16x128xi32>
    %166 = arith.cmpi slt, %164, %165 : vector<16x128xi32>
    %167 = arith.andi %162, %166 : vector<16x128xi1>
    %168 = vector.shape_cast %167 : vector<16x128xi1> to vector<1x16x128xi1>
    %169 = vector.shape_cast %168 : vector<1x16x128xi1> to vector<1x16x128xi1>
    %170 = vector.broadcast %169 : vector<1x16x128xi1> to vector<2x16x128xi1>
    %cst_98 = arith.constant 0.000000e+00 : bf16
    %171 = vector.broadcast %cst_98 : bf16 to vector<2x16x128xbf16>
    %172 = arith.select %170, %148, %171 : vector<2x16x128xi1>, vector<2x16x128xbf16>
    %173 = vector.shape_cast %172 : vector<2x16x128xbf16> to vector<32x128xbf16>
    %c6 = arith.constant 6 : index
    %c0_99 = arith.constant 0 : index
    %c0_100 = arith.constant 0 : index
    %174 = vector.load %arg2[%c6, %c0_99, %c0_100] : memref<9x128x32xbf16, #tpu.memory_space<vmem>>, vector<1x128x32xbf16>
    %175 = vector.shape_cast %174 : vector<1x128x32xbf16> to vector<128x32xbf16>
    %cst_101 = arith.constant dense<0.000000e+00> : vector<32x32xf32>
    %176 = tpu.matmul %173, %175, %cst_101 {dimension_numbers = #tpu.dot_dimension_numbers<[1], [0], [0], [1], [0, 0, 1, 1], [], []>} : vector<32x128xbf16>, vector<128x32xbf16>, vector<32x32xf32> -> vector<32x32xf32>
    %177 = arith.addf %147, %176 : vector<32x32xf32>
    %c0_102 = arith.constant 0 : index
    %c0_103 = arith.constant 0 : index
    %178 = vector.load %arg8[%c0_102, %c0_103] : memref<32x32xf32, #tpu.memory_space<vmem>>, vector<32x32xf32>
    tpu.vector_store %arg8[%c0_102, %c0_103], %177 {strides = array<i32>} : memref<32x32xf32, #tpu.memory_space<vmem>>, vector<32x32xf32>,
    %c0_104 = arith.constant 0 : index
    %c0_105 = arith.constant 0 : index
    %179 = vector.load %arg8[%c0_104, %c0_105] : memref<32x32xf32, #tpu.memory_space<vmem>>, vector<32x32xf32>
    %c0_106 = arith.constant 0 : index
    %c12 = arith.constant 12 : index
    %c0_107 = arith.constant 0 : index
    %180 = vector.load %arg1[%c0_106, %c12, %c0_107] : memref<2x32x128xbf16, #tpu.memory_space<vmem>>, vector<2x16x128xbf16>
    %181 = vector.shape_cast %180 : vector<2x16x128xbf16> to vector<32x128xbf16>
    %c7_108 = arith.constant 7 : index
    %c0_109 = arith.constant 0 : index
    %c0_110 = arith.constant 0 : index
    %182 = vector.load %arg2[%c7_108, %c0_109, %c0_110] : memref<9x128x32xbf16, #tpu.memory_space<vmem>>, vector<1x128x32xbf16>
    %183 = vector.shape_cast %182 : vector<1x128x32xbf16> to vector<128x32xbf16>
    %cst_111 = arith.constant dense<0.000000e+00> : vector<32x32xf32>
    %184 = tpu.matmul %181, %183, %cst_111 {dimension_numbers = #tpu.dot_dimension_numbers<[1], [0], [0], [1], [0, 0, 1, 1], [], []>} : vector<32x128xbf16>, vector<128x32xbf16>, vector<32x32xf32> -> vector<32x32xf32>
    %185 = arith.addf %179, %184 : vector<32x32xf32>
    %c0_112 = arith.constant 0 : index
    %c0_113 = arith.constant 0 : index
    %186 = vector.load %arg8[%c0_112, %c0_113] : memref<32x32xf32, #tpu.memory_space<vmem>>, vector<32x32xf32>
    tpu.vector_store %arg8[%c0_112, %c0_113], %185 {strides = array<i32>} : memref<32x32xf32, #tpu.memory_space<vmem>>, vector<32x32xf32>,
    %c0_114 = arith.constant 0 : index
    %c0_115 = arith.constant 0 : index
    %187 = vector.load %arg8[%c0_114, %c0_115] : memref<32x32xf32, #tpu.memory_space<vmem>>, vector<32x32xf32>
    %c0_116 = arith.constant 0 : index
    %c13 = arith.constant 13 : index
    %c0_117 = arith.constant 0 : index
    %188 = vector.load %arg1[%c0_116, %c13, %c0_117] : memref<2x32x128xbf16, #tpu.memory_space<vmem>>, vector<2x16x128xbf16>
    %c1_i32_118 = arith.constant 1 : i32
    %189 = vector.broadcast %c1_i32_118 : i32 to vector<16x128xi32>
    %190 = arith.addi %2, %189 : vector<16x128xi32>
    %c0_i32_119 = arith.constant 0 : i32
    %191 = vector.broadcast %c0_i32_119 : i32 to vector<16x128xi32>
    %192 = arith.cmpi sge, %190, %191 : vector<16x128xi32>
    %c1_i32_120 = arith.constant 1 : i32
    %193 = vector.broadcast %c1_i32_120 : i32 to vector<16x128xi32>
    %194 = arith.addi %2, %193 : vector<16x128xi32>
    %c4_i32_121 = arith.constant 4 : i32
    %195 = vector.broadcast %c4_i32_121 : i32 to vector<16x128xi32>
    %196 = arith.cmpi slt, %194, %195 : vector<16x128xi32>
    %197 = arith.andi %192, %196 : vector<16x128xi1>
    %c1_i32_122 = arith.constant 1 : i32
    %198 = vector.broadcast %c1_i32_122 : i32 to vector<16x128xi32>
    %199 = arith.addi %4, %198 : vector<16x128xi32>
    %c0_i32_123 = arith.constant 0 : i32
    %200 = vector.broadcast %c0_i32_123 : i32 to vector<16x128xi32>
    %201 = arith.cmpi sge, %199, %200 : vector<16x128xi32>
    %202 = arith.andi %197, %201 : vector<16x128xi1>
    %c1_i32_124 = arith.constant 1 : i32
    %203 = vector.broadcast %c1_i32_124 : i32 to vector<16x128xi32>
    %204 = arith.addi %4, %203 : vector<16x128xi32>
    %c4_i32_125 = arith.constant 4 : i32
    %205 = vector.broadcast %c4_i32_125 : i32 to vector<16x128xi32>
    %206 = arith.cmpi slt, %204, %205 : vector<16x128xi32>
    %207 = arith.andi %202, %206 : vector<16x128xi1>
    %208 = vector.shape_cast %207 : vector<16x128xi1> to vector<1x16x128xi1>
    %209 = vector.shape_cast %208 : vector<1x16x128xi1> to vector<1x16x128xi1>
    %210 = vector.broadcast %209 : vector<1x16x128xi1> to vector<2x16x128xi1>
    %cst_126 = arith.constant 0.000000e+00 : bf16
    %211 = vector.broadcast %cst_126 : bf16 to vector<2x16x128xbf16>
    %212 = arith.select %210, %188, %211 : vector<2x16x128xi1>, vector<2x16x128xbf16>
    %213 = vector.shape_cast %212 : vector<2x16x128xbf16> to vector<32x128xbf16>
    %c8_127 = arith.constant 8 : index
    %c0_128 = arith.constant 0 : index
    %c0_129 = arith.constant 0 : index
    %214 = vector.load %arg2[%c8_127, %c0_128, %c0_129] : memref<9x128x32xbf16, #tpu.memory_space<vmem>>, vector<1x128x32xbf16>
    %215 = vector.shape_cast %214 : vector<1x128x32xbf16> to vector<128x32xbf16>
    %cst_130 = arith.constant dense<0.000000e+00> : vector<32x32xf32>
    %216 = tpu.matmul %213, %215, %cst_130 {dimension_numbers = #tpu.dot_dimension_numbers<[1], [0], [0], [1], [0, 0, 1, 1], [], []>} : vector<32x128xbf16>, vector<128x32xbf16>, vector<32x32xf32> -> vector<32x32xf32>
    %217 = arith.addf %187, %216 : vector<32x32xf32>
    %c0_131 = arith.constant 0 : index
    %c0_132 = arith.constant 0 : index
    %218 = vector.load %arg8[%c0_131, %c0_132] : memref<32x32xf32, #tpu.memory_space<vmem>>, vector<32x32xf32>
    tpu.vector_store %arg8[%c0_131, %c0_132], %217 {strides = array<i32>} : memref<32x32xf32, #tpu.memory_space<vmem>>, vector<32x32xf32>,
    %c0_133 = arith.constant 0 : index
    %c0_134 = arith.constant 0 : index
    %219 = vector.load %arg8[%c0_133, %c0_134] : memref<32x32xf32, #tpu.memory_space<vmem>>, vector<32x32xf32>
    %c0_135 = arith.constant 0 : index
    %c0_136 = arith.constant 0 : index
    %220 = vector.load %arg3[%c0_135, %c0_136] : memref<1x32xf32, #tpu.memory_space<vmem>>, vector<1x32xf32>
    %221 = vector.broadcast %220 : vector<1x32xf32> to vector<32x32xf32>
    %222 = arith.mulf %219, %221 : vector<32x32xf32>
    %c0_137 = arith.constant 0 : index
    %c0_138 = arith.constant 0 : index
    %223 = vector.load %arg4[%c0_137, %c0_138] : memref<1x32xf32, #tpu.memory_space<vmem>>, vector<1x32xf32>
    %224 = vector.broadcast %223 : vector<1x32xf32> to vector<32x32xf32>
    %225 = arith.addf %222, %224 : vector<32x32xf32>
    %cst_139 = arith.constant 2.000000e-01 : f32
    %226 = vector.broadcast %cst_139 : f32 to vector<32x32xf32>
    %227 = arith.mulf %226, %225 : vector<32x32xf32>
    %228 = arith.maximumf %225, %227 : vector<32x32xf32>
    %229 = vector.shape_cast %228 : vector<32x32xf32> to vector<2x16x32xf32>
    %c0_140 = arith.constant 0 : index
    %c0_141 = arith.constant 0 : index
    %230 = vector.load %arg5[%c0_140, %c0_141] : memref<16x32xf32, #tpu.memory_space<vmem>>, vector<16x32xf32>
    %231 = vector.shape_cast %230 : vector<16x32xf32> to vector<1x16x32xf32>
    %232 = vector.broadcast %231 : vector<1x16x32xf32> to vector<2x16x32xf32>
    %233 = arith.mulf %229, %232 : vector<2x16x32xf32>
    %cst_142 = arith.constant dense<0.000000e+00> : vector<2x32xf32>
    %234 = vector.multi_reduction <add>, %233, %cst_142 [1] : vector<2x16x32xf32> to vector<2x32xf32>
    %cst_143 = arith.constant dense<0.000000e+00> : vector<2xf32>
    %235 = vector.multi_reduction <add>, %234, %cst_143 [1] : vector<2x32xf32> to vector<2xf32>
    %236 = vector.shape_cast %235 : vector<2xf32> to vector<2x1xf32>
    %c0_144 = arith.constant 0 : index
    %c0_145 = arith.constant 0 : index
    %237 = vector.load %arg6[%c0_144, %c0_145] : memref<1x1xf32, #tpu.memory_space<vmem>>, vector<1x1xf32>
    %238 = vector.broadcast %237 : vector<1x1xf32> to vector<2x1xf32>
    %239 = arith.addf %236, %238 : vector<2x1xf32>
    %240 = arith.negf %239 : vector<2x1xf32>
    %241 = math.exp %240 : vector<2x1xf32>
    %cst_146 = arith.constant 1.000000e+00 : f32
    %242 = vector.broadcast %cst_146 : f32 to vector<2x1xf32>
    %243 = arith.addf %242, %241 : vector<2x1xf32>
    %244 = arith.divf %242, %243 : vector<2x1xf32>
    %c0_147 = arith.constant 0 : index
    %c0_148 = arith.constant 0 : index
    %245 = vector.load %arg7[%c0_147, %c0_148] : memref<2x1xf32, #tpu.memory_space<vmem>>, vector<2x1xf32>
    tpu.vector_store %arg7[%c0_147, %c0_148], %244 {strides = array<i32>} : memref<2x1xf32, #tpu.memory_space<vmem>>, vector<2x1xf32>,
    return
  }
  func.func @transform_0(%arg0: i32) -> (i32, i32, i32) {
    %c0_i32 = arith.constant 0 : i32
    %c0_i32_0 = arith.constant 0 : i32
    %c0_i32_1 = arith.constant 0 : i32
    return %arg0, %c0_i32, %c0_i32_0 : i32, i32, i32
  }
  func.func @transform_1(%arg0: i32) -> (i32, i32, i32) {
    %c0_i32 = arith.constant 0 : i32
    %c0_i32_0 = arith.constant 0 : i32
    %c0_i32_1 = arith.constant 0 : i32
    %c0_i32_2 = arith.constant 0 : i32
    return %c0_i32, %c0_i32_0, %c0_i32_1 : i32, i32, i32
  }
  func.func @transform_2(%arg0: i32) -> (i32, i32) {
    %c0_i32 = arith.constant 0 : i32
    %c0_i32_0 = arith.constant 0 : i32
    %c0_i32_1 = arith.constant 0 : i32
    return %c0_i32, %c0_i32_0 : i32, i32
  }
  func.func @transform_3(%arg0: i32) -> (i32, i32) {
    %c0_i32 = arith.constant 0 : i32
    %c0_i32_0 = arith.constant 0 : i32
    %c0_i32_1 = arith.constant 0 : i32
    return %c0_i32, %c0_i32_0 : i32, i32
  }
  func.func @transform_4(%arg0: i32) -> (i32, i32) {
    %c0_i32 = arith.constant 0 : i32
    %c0_i32_0 = arith.constant 0 : i32
    %c0_i32_1 = arith.constant 0 : i32
    return %c0_i32, %c0_i32_0 : i32, i32
  }
  func.func @transform_5(%arg0: i32) -> (i32, i32) {
    %c0_i32 = arith.constant 0 : i32
    %c0_i32_0 = arith.constant 0 : i32
    %c0_i32_1 = arith.constant 0 : i32
    return %c0_i32, %c0_i32_0 : i32, i32
  }
  func.func @transform_6(%arg0: i32) -> (i32, i32) {
    %c0_i32 = arith.constant 0 : i32
    %c0_i32_0 = arith.constant 0 : i32
    return %arg0, %c0_i32 : i32, i32
  }
}

</mosaic_0001>

<bundles_post_ra>
// kernel: _forward_cond.1
= control target key start
LH: loop header
LB: loop body
LE: loop exit
PB: predicated region body
PF: predicated region fallthrough
CT: control target
= control target key end

     0   :  { %s3161_s0 = inlined_call_operand.vmem [shape: bf16[2,32,128], index: 0, kind: input, shape index: {}]   ;;  %s3162_s1 = inlined_call_operand.hbm [shape: bf16[9,128,32], index: 1, kind: input, shape index: {}]   ;;  %s3163_s2 = inlined_call_operand.vmem [shape: f32[1,32], index: 2, kind: input, shape index: {}]   ;;  %s3164_s3 = inlined_call_operand.vmem [shape: f32[1,32], index: 3, kind: input, shape index: {}]   ;;  %s3165_s4 = inlined_call_operand.vmem [shape: f32[16,32], index: 4, kind: input, shape index: {}]   ;;  %s3166_s5 = inlined_call_operand.<no memory space> [shape: f32[1,1], index: 5, kind: input, shape index: {}]   ;;  %s3167_s6 = inlined_call_operand.vmem [shape: f32[2,1], index: 6, kind: output, shape index: {}]  }
   0x1   :  { %v11_v0 = vstv %s3166_s5 }
   0x2   :  { %12 = vst [vmem:[#allocation3] sm:$0x1] %v11_v0 }
   0x3   :  { %13 = vsyncpa [#allocation5], 0  ;;  %s2510_s23 = smov [#allocation4]   ;;  %s2486_s27 = scalar_lea.hbm %s3162_s1, 9216 }
   0x4   :  { %s21_s24 = sshll.u32 %s2510_s23, 4  ;;  %p2487_p0 = scmp.ne.s32.totalorder %s3162_s1, %s2486_s27  ;;  %s22_s24 = int_to_ptr.vmem [resolvable:$true] %s21_s24 }
   0x5   :  { %p2490_p1 = scmp.lt.u32.totalorder %s2486_s27, %s3162_s1 }
   0x7   :  { %p2492_p2 = pnand %p2490_p1, %p2487_p0 }
   0x9   :  { %2495 = shalt.err (!%p2492_p2)
}
   0xa   :  { %s2496_s5 = scalar_lea.vmem %s22_s24, 9216  ;;  %p2501_p4 = scmp.lt.s32.totalorder %s22_s24, %s22_s24 }
   0xb   :  { %p2497_p3 = scmp.ne.s32.totalorder %s22_s24, %s2496_s5  ;;  %p2502_p5 = scmp.lt.s32.totalorder %s2496_s5, %s2496_s5 }
   0xd   :  { %p2503_p6 = por %p2502_p5, %p2501_p4 }
   0xf   :  { %p2504_p7 = pnand %p2503_p6, %p2497_p3 }
  0x11   :  { %2507 = shalt.err (!%p2504_p7)
}
  0x12   :  { %s2511_s8 = smov 64   ;;  %s2512_s9 = smov 4  }
  0x13   :  { %27 = dma.hbm_to_vmem [thread:$0]  %s3162_s1, 9216, %s22_s24, [#allocation5], %s2511_s8, %s2511_s8, %s2512_s9  }
  0x14   :  { %2508 = dma.done.wait [#allocation5], 9216  }
  0x15   :  { %2509 = vsyncadd [#allocation5], 4294958080  ;;  %v2408_v1 = vld [vmem:[#allocation4 + $0x100] sm:$0xff]   ;;  %v42_v2 = vlaneseq  ;;  %v2409_v3 = vld [vmem:[#allocation4 + $0x108] sm:$0xff]   ;;  %vm220_vm9 = vsmask.f32 1280 }
  0x16   :  { %2224 = vmatprep.subr.bf16.mxu0 %v2408_v1  ;;  %v2411_v4 = vld [vmem:[#allocation4] sm:$0xff]   ;;  %v2410_v5 = vld [vmem:[#allocation4 + $0x110] sm:$0xff]   ;;  %v2413_v7 = vld [vmem:[#allocation4 + $0x8] sm:$0xff]   ;;  %vm221_vm12 = vsmask.f32 5392  ;;  %v2513_v35 = vmov 0  }
  0x17   :  { %2225 = vmatpush3.bf16.msra.mxu0 %v2408_v1  ;;  %v43_v6 = vshrl.u32 %v42_v2, 7  ;;  %2244 = vmatprep.subr.bf16.mxu1 %v2411_v4  ;;  %v2415_v8 = vld [vmem:[#allocation4 + $0x10] sm:$0xff]   ;;  %v2412_v9 = vld [vmem:[#allocation4 + $0x118] sm:$0xff]   ;;  %v2414_v13 = vld [vmem:[#allocation4 + $0x120] sm:$0xff]   ;;  %vm251_vm14 = vsmask.f32 2304 }
  0x18   :  { %2226 = vmatprep.subr.bf16.mxu0 %v2409_v3  ;;  %2245 = vmatpush3.bf16.msra.mxu1 %v2411_v4  ;;  %v2417_v12 = vld [vmem:[#allocation4 + $0x18] sm:$0xff]   ;;  %v2422_v17 = vld [vmem:[%s3161_s0 + $0x4] sm:$0xff]   ;;  %v2418_v25 = vld [vmem:[#allocation4 + $0x130] sm:$0xff]   ;;  %vm252_vm15 = vsmask.f32 6416 }
  0x19   :  { %2246 = vmatprep.subr.bf16.mxu1 %v2413_v7  ;;  %v44_v10 = vadd.s32 8, %v43_v6  ;;  %v2564_v11 = vshra.s32 %v43_v6, 2  ;;  %v47_v15 = vand.u32 3, %v43_v6  ;;  %v2419_v19 = vld [vmem:[#allocation4 + $0x20] sm:$0xff]   ;;  %v2416_v20 = vld [vmem:[#allocation4 + $0x128] sm:$0xff]   ;;  %2240 = vmatprep.mubr.bf16.mxu0 %v2422_v17  ;;  %v2424_v27 = vld [vmem:[#allocation4 + $0x30] sm:$0xff]  }
  0x1a   :  { %v2421_v24 = vld [vmem:[#allocation4 + $0x28] sm:$0xff]   ;;  %v2420_v29 = vld [vmem:[#allocation4 + $0x138] sm:$0xff]   ;;  %v2425_v32 = vld [vmem:[#allocation4 + $0x40] sm:$0xff]  }
  0x1b   :  { %2227 = vmatpush3.bf16.msra.mxu0 %v2409_v3  ;;  %v2566_v14 = vshra.s32 %v44_v10, 2  ;;  %v48_v16 = vand.u32 3, %v44_v10  ;;  %v194_v18 = vadd.s32 4294967295, %v2564_v11  ;;  %v2573_v22 = vadd.s32 4294967295, %v47_v15  ;;  %v2426_v34 = vld [vmem:[#allocation4 + $0x38] sm:$0xff]   ;;  %v2427_v45 = vld [vmem:[#allocation4 + $0x48] sm:$0xff]  }
  0x1c   :  { %2228 = vmatprep.subr.bf16.mxu0 %v2410_v5  ;;  %2247 = vmatpush3.bf16.msra.mxu1 %v2413_v7  ;;  %v2599_v31 = vadd.s32 1, %v47_v15  ;;  %v2608_v37 = vadd.s32 1, %v2564_v11  ;;  %v2423_v38 = vld [vmem:[%s3161_s0 + $0x14] sm:$0xff]   ;;  %v188_v46 = vld [vmem:[%s3161_s0] sm:$0xe] }
  0x1d   :  { %2248 = vmatprep.subr.bf16.mxu1 %v2415_v8  ;;  %v195_v21 = vadd.s32 4294967295, %v2566_v14  ;;  %vm196_vm0 = vcmp.ge.s32.totalorder %v194_v18, 0  ;;  %v2575_v23 = vadd.s32 4294967295, %v48_v16  ;;  %vm198_vm1 = vcmp.lt.s32.totalorder %v194_v18, 4  ;;  %v2622_v49 = vld [vmem:[#allocation4 + $0x80] sm:$0xff]   ;;  %v2428_v4 = vld [vmem:[#allocation4 + $0x50] sm:$0xff]  }
  0x1e   :  { %vm3169_vm4 = vcmp.ge.s32.totalorder %v2573_v22, 0  ;;  %vm2578_vm5 = vmand %vm196_vm0, %vm198_vm1  ;;  %v2601_v33 = vadd.s32 1, %v48_v16  ;;  %v2615_v42 = vadd.s32 1, %v2566_v14  ;;  %vm618_vm0 = vcmp.lt.s32.totalorder %v2599_v31, 4  ;;  %v191_v53 = vld [vmem:[%s3161_s0 + $0x10] sm:$0xe] }
  0x1f   :  { %2229 = vmatpush3.bf16.msra.mxu0 %v2410_v5  ;;  %vm197_vm2 = vcmp.ge.s32.totalorder %v195_v21, 0  ;;  %vm199_vm3 = vcmp.lt.s32.totalorder %v195_v21, 4  ;;  %vm3168_vm6 = vcmp.ge.s32.totalorder %v2575_v23, 0  ;;  %vm206_vm8 = vmand %vm2578_vm5, %vm3169_vm4  ;;  %v189_v55 = vld [vmem:[%s3161_s0 + $0x4] sm:$0xf] }
  0x20   :  { %2230 = vmatprep.subr.bf16.mxu0 %v2412_v9  ;;  %2249 = vmatpush3.bf16.msra.mxu1 %v2415_v8  ;;  %vm2583_vm7 = vmand %vm197_vm2, %vm199_vm3  ;;  %vm3170_vm1 = vcmp.lt.s32.totalorder %v2601_v33, 4  ;;  %vm455_vm3 = vcmask 1041408   ;;  %v190_v56 = vld [vmem:[%s3161_s0 + $0x8] sm:$0x3]  ;;  %v192_v57 = vld [vmem:[%s3161_s0 + $0x14] sm:$0xf] }
  0x21   :  { %2250 = vmatprep.subr.bf16.mxu1 %v2417_v12  ;;  %vm2595_vm10 = vmand %vm2583_vm7, %vm3168_vm6  ;;  %v193_v59 = vld [vmem:[%s3161_s0 + $0x18] sm:$0x3] }
  0x22   :  { %vm216_vm11 = vmpackc.low %vm206_vm8, %vm206_vm8  ;;  %vm456_vm8 = vcmask 1045508  }
  0x23   :  { %2231 = vmatpush3.bf16.msra.mxu0 %v2412_v9  ;;  %vm217_vm13 = vmpackc.low %vm2595_vm10, %vm2595_vm10  ;;  %v218_v36 = vsel %vm216_vm11, 65537, %v2513_v35  ;;  %vm1321_vm10 = vcmp.lt.s32.totalorder %v2615_v42, 4 }
  0x24   :  { %2232 = vmatprep.subr.bf16.mxu0 %v2414_v13  ;;  %2251 = vmatpush3.bf16.msra.mxu1 %v2417_v12  ;;  %v219_v39 = vsel %vm217_vm13, 65537, %v2513_v35  ;;  %v224_v40 = vshrl.u32 %v218_v36, 16  ;;  %v227_v41 = vshll.u32 %v218_v36, 16  ;;  %vm2626_vm2 = vmor %vm220_vm9, %vm221_vm12  ;;  %vm1320_vm12 = vcmp.lt.s32.totalorder %v2608_v37, 4 }
  0x25   :  { %2252 = vmatprep.subr.bf16.mxu1 %v2419_v19  ;;  %v233_v43 = vshrl.u32 %v219_v39, 16  ;;  %v236_v44 = vshll.u32 %v219_v39, 16  ;;  %vm2656_vm11 = vmor %vm251_vm14, %vm252_vm15  ;;  %vm3187_vm15 = vcmp.ge.s32.totalorder %v2608_v37, 0 }
  0x26   :  { %v226_v47 = vrot.slane %v224_v40, 6  ;;  %v229_v48 = vrot.slane %v227_v41, 7  ;;  %vm2664_vm4 = vmand %vm2578_vm5, %vm618_vm0  ;;  %v444_v40 = vld [vmem:[%s3161_s0 + $0x4] sm:$0xf] }
  0x27   :  { %2233 = vmatpush3.bf16.msra.mxu0 %v2414_v13  ;;  %v235_v51 = vrot.slane %v233_v43, 6  ;;  %v238_v52 = vrot.slane %v236_v44, 7  ;;  %vm2684_vm5 = vmor %vm455_vm3, %vm456_vm8  ;;  %vm3190_vm8 = vcmp.ge.s32.totalorder %v2615_v42, 0 }
  0x28   :  { %2234 = vmatprep.subr.bf16.mxu0 %v2416_v20  ;;  %2253 = vmatpush3.bf16.msra.mxu1 %v2419_v19  ;;  %v230_v54 = vor.u32 %v229_v48, %v226_v47  ;;  %vm2708_vm3 = vmand %vm3187_vm15, %vm1320_vm12  ;;  %vm3196_vm12 = vcmp.ge.s32.totalorder %v2564_v11, 0  ;;  %vm3199_vm15 = vcmp.ge.s32.totalorder %v2575_v23, 0  ;;  %v2431_v19 = vld [vmem:[#allocation4 + $0x88] sm:$0xff]  }
  0x29   :  { %2254 = vmatprep.subr.bf16.mxu1 %v2421_v24  ;;  %v239_v58 = vor.u32 %v238_v52, %v235_v51 }
  0x2a   :  { %v231_v60 = vrot.slane %v230_v54, 4  ;;  %vm242_vm9 = vcmp.ne.s16.totalorder %v230_v54, 0  ;;  %v2700_v54 = vld [vmem:[%s3161_s0 + $0x14] sm:$0xf] }
  0x2b   :  { %2235 = vmatpush3.bf16.msra.mxu0 %v2416_v20  ;;  %v241_v61 = vrot.slane %v239_v58, 4  ;;  %v245_v62 = vsel %vm242_vm9, %v188_v46, 0  ;;  %v248_v63 = vsel %vm242_vm9, %v191_v53, 0  ;;  %vm856_vm9 = vcmp.lt.s32.totalorder %v2564_v11, 4  ;;  %v445_v46 = vld [vmem:[%s3161_s0 + $0x8] sm:$0x3] }
  0x2c   :  { %2236 = vmatprep.subr.bf16.mxu0 %v2418_v25  ;;  %2255 = vmatpush3.bf16.msra.mxu1 %v2421_v24  ;;  %v240_v0 = vsel %vm2626_vm2, %v231_v60, %v239_v58  ;;  %v255_v1 = vshrl.u32 %v245_v62, 16  ;;  %v258_v2 = vshll.u32 %v245_v62, 16  ;;  %v283_v3 = vshrl.u32 %v248_v63, 16  ;;  %v2430_v24 = vld [vmem:[#allocation4 + $0x58] sm:$0xff]   ;;  %v2432_v53 = vld [vmem:[#allocation4 + $0x60] sm:$0xff]   ;;  %v2434_v62 = vld [vmem:[#allocation4 + $0x68] sm:$0xff]  }
  0x2d   :  { %2256 = vmatprep.subr.bf16.mxu1 %v2424_v27  ;;  %vm243_vm13 = vcmp.ne.s16.totalorder %v240_v0, 0  ;;  %vm244_vm6 = vcmp.ne.s16.totalorder %v241_v61, 0  ;;  %v286_v5 = vshll.u32 %v248_v63, 16  ;;  %v460_v63 = vrot.slane %v444_v40, 6  ;;  %v609_v40 = vld [vmem:[%s3161_s0 + $0x10] sm:$0xc] }
  0x2e   :  { %v246_v6 = vsel %vm243_vm13, %v189_v55, 0  ;;  %v247_v7 = vsel %vm244_vm6, %v190_v56, 0  ;;  %v249_v8 = vsel %vm243_vm13, %v192_v57, 0  ;;  %v250_v9 = vsel %vm244_vm6, %v193_v59, 0  ;;  %vm2672_vm6 = vmand %vm2583_vm7, %vm3170_vm1 }
  0x2f   :  { %2237 = vmatpush3.bf16.msra.mxu0 %v2418_v25  ;;  %v257_v12 = vrot.slane %v255_v1, 5  ;;  %v260_v13 = vrot.slane %v258_v2, 6  ;;  %v264_v15 = vshrl.u32 %v246_v6, 16  ;;  %v267_v16 = vshll.u32 %v246_v6, 16  ;;  %vm626_vm7 = vmpackc.low %vm2664_vm4, %vm2664_vm4 }
  0x30   :  { %2238 = vmatprep.subr.bf16.mxu0 %v2420_v29  ;;  %2257 = vmatpush3.bf16.msra.mxu1 %v2424_v27  ;;  %v274_v17 = vshrl.u32 %v247_v7, 16  ;;  %v277_v18 = vshll.u32 %v247_v7, 16  ;;  %v285_v20 = vrot.slane %v283_v3, 5  ;;  %v288_v21 = vrot.slane %v286_v5, 6  ;;  %vm627_vm14 = vmpackc.low %vm2672_vm6, %vm2672_vm6  ;;  %v446_v3 = vld [vmem:[%s3161_s0 + $0x10] sm:$0xc] }
  0x31   :  { %2258 = vmatprep.subr.bf16.mxu1 %v2426_v34  ;;  %v261_v25 = vor.u32 %v260_v13, %v257_v12  ;;  %v266_v27 = vrot.slane %v264_v15, 5  ;;  %v292_v26 = vshrl.u32 %v249_v8, 16  ;;  %v295_v39 = vshll.u32 %v249_v8, 16  ;;  %vm2722_vm13 = vmand %vm3190_vm8, %vm1321_vm10 }
  0x32   :  { %v279_v36 = vrot.slane %v277_v18, 6  ;;  %v305_v52 = vshll.u32 %v250_v9, 16  ;;  %v628_v0 = vsel %vm626_vm7, 65537, %v2513_v35  ;;  %v463_v2 = vrot.slane %v445_v46, 6  ;;  %vm2749_vm7 = vmand %vm3196_vm12, %vm856_vm9 }
  0x33   :  { %2239 = vmatpush3.bf16.msra.mxu0 %v2420_v29  ;;  %v269_v29 = vrot.slane %v267_v16, 6  ;;  %v262_v41 = vrot.slane %v261_v25, 4  ;;  %v294_v44 = vrot.slane %v292_v26, 5  ;;  %v297_v51 = vrot.slane %v295_v39, 6  ;;  %vm2765_vm8 = vmand %vm2722_vm13, %vm3199_vm15  ;;  %v2433_v26 = vld [vmem:[#allocation4 + $0x90] sm:$0xff]   ;;  %v2438_v39 = vld [vmem:[#allocation4 + $0x78] sm:$0xff]  }
  0x34   :  { %2264 = vmatprep.subr.bf16.mxu0 %v2425_v32  ;;  %2259 = vmatpush3.bf16.msra.mxu1 %v2426_v34  ;;  %v276_v34 = vrot.slane %v274_v17, 5  ;;  %v307_v61 = vrot.slane %v305_v52, 6  ;;  %v467_v5 = vrot.slane %v2700_v54, 6  ;;  %vm3193_vm4 = vcmp.ge.s32.totalorder %v2573_v22, 0  ;;  %v606_v22 = vld [vmem:[%s3161_s0] sm:$0xc] }
  0x35   :  { %2284 = vmatprep.subr.bf16.mxu1 %v2622_v49  ;;  %v270_v43 = vor.u32 %v269_v29, %v266_v27  ;;  %v298_v60 = vor.u32 %v297_v51, %v294_v44  ;;  %vm2739_vm10 = vmand %vm2708_vm3, %vm3193_vm4  ;;  %v462_v15 = vrot.slane %v460_v63, 4  ;;  %v629_v16 = vsel %vm627_vm14, 65537, %v2513_v35  ;;  %v607_v52 = vld [vmem:[%s3161_s0 + $0x4] sm:$0xf]  ;;  %v611_v54 = vld [vmem:[%s3161_s0 + $0x18] sm:$0x7] }
  0x36   :  { %2241 = vmatmul.mubr.bf16.vlgmr.msra.gmra.mrb[0].mxu0 %v2423_v38  ;;  %v289_v38 = vor.u32 %v288_v21, %v285_v20  ;;  %v280_v47 = vor.u32 %v279_v36, %v276_v34  ;;  %vm855_vm9 = vcmp.ge.s32.totalorder %v2566_v14, 0  ;;  %vm857_vm6 = vcmp.lt.s32.totalorder %v2566_v14, 4  ;;  %v2436_v21 = vld [vmem:[#allocation4 + $0x70] sm:$0xff]   ;;  %vm3202_vm14 = vmmov %vm3193_vm4 }
  0x37   :  { %2265 = vmatpush3.bf16.msra.mxu0 %v2425_v32  ;;  %v443_v32 = vld [vmem:[%s3161_s0] sm:$0xc]  ;;  %v271_v55 = vsel %vm2656_vm11, %v262_v41, %v270_v43  ;;  %v272_v56 = vrot.slane %v270_v43, 4  ;;  %v300_v8 = vrot.slane %v298_v60, 4  ;;  %v464_v20 = vsel %vm2684_vm5, %v462_v15, %v463_v2  ;;  %vm2779_vm4 = vmand %vm2749_vm7, %vm3202_vm14 }
  0x38   :  { %2266 = vmatprep.subr.bf16.mxu0 %v2427_v45  ;;  %v290_v48 = vrot.slane %v289_v38, 4  ;;  %v2054_v58 = vrot.slane %v443_v32, 10  ;;  %v2055_v25 = vrot.slane %v446_v3, 10  ;;  %v469_v27 = vrot.slane %v467_v5, 4  ;;  %vm868_vm12 = vmpackc.low %vm2779_vm4, %vm2779_vm4 }
  0x39   :  { %v281_v1 = vsel %vm2656_vm11, %v272_v56, %v280_v47  ;;  %v631_v32 = vshrl.u32 %v628_v0, 16  ;;  %v634_v34 = vshll.u32 %v628_v0, 16  ;;  %v640_v36 = vshrl.u32 %v629_v16, 16  ;;  %v608_v47 = vld [vmem:[%s3161_s0 + $0x8] sm:$0x7]  ;;  %vm2813_vm14 = vmand %vm2708_vm3, %vm618_vm0 }
  0x3a   :  { %v2044_v6 = vcombine.low %v271_v55, %v281_v1  ;;  %v299_v7 = vsel %vm2656_vm11, %v290_v48, %v298_v60  ;;  %v461_v13 = vsel %vm2684_vm5, %v2054_v58, %v460_v63  ;;  %v643_v38 = vshll.u32 %v629_v16, 16  ;;  %v2435_v55 = vld [vmem:[#allocation4 + $0x98] sm:$0xff]   ;;  %vm2821_vm1 = vmand %vm855_vm9, %vm857_vm6  ;;  %v2437_v1 = vld [vmem:[#allocation4 + $0xa0] sm:$0xff]  }
  0x3b   :  { %2267 = vmatpush3.bf16.msra.mxu0 %v2427_v45  ;;  %v302_v45 = vshrl.u32 %v250_v9, 16  ;;  %v633_v41 = vrot.slane %v631_v32, 5  ;;  %v636_v43 = vrot.slane %v634_v34, 6  ;;  %v642_v44 = vrot.slane %v640_v36, 5 }
  0x3c   :  { %2268 = vmatprep.subr.bf16.mxu0 %v2428_v4  ;;  %2260 = vmatprep.mubr.bf16.mxu1 %v2044_v6  ;;  %v2831_v59 = vsel %vm868_vm12, 65537, %v2513_v35  ;;  %vm3209_vm9 = vcmp.lt.s32.totalorder %v2601_v33, 4  ;;  %vm3212_vm12 = vcmp.ge.s32.totalorder %v2575_v23, 0 }
  0x3d   :  { %v304_v57 = vrot.slane %v302_v45, 5  ;;  %v645_v45 = vrot.slane %v643_v38, 6  ;;  %v637_v48 = vor.u32 %v636_v43, %v633_v41  ;;  %vm2839_vm6 = vmand %vm2722_vm13, %vm3209_vm9  ;;  %vm873_vm9 = vsmask.f32 7440 }
  0x3e   :  { %vm2847_vm13 = vmand %vm2821_vm1, %vm3212_vm12 }
  0x3f   :  { %2269 = vmatpush3.bf16.msra.mxu0 %v2428_v4  ;;  %v448_v4 = vld [vmem:[%s3161_s0 + $0x18] sm:$0x3]  ;;  %v308_v9 = vor.u32 %v307_v61, %v304_v57  ;;  %v646_v51 = vor.u32 %v645_v45, %v642_v44  ;;  %v638_v56 = vrot.slane %v637_v48, 4  ;;  %vm649_vm15 = vcmp.ne.s16.totalorder %v637_v48, 0  ;;  %v2440_v61 = vld [vmem:[#allocation4 + $0xc0] sm:$0xff]  }
  0x40   :  { %2270 = vmatprep.subr.bf16.mxu0 %v2430_v24  ;;  %v470_v29 = vrot.slane %v448_v4, 6  ;;  %v655_v63 = vsel %vm649_vm15, %v609_v40, 0 }
  0x41   :  { %v309_v17 = vsel %vm2656_vm11, %v300_v8, %v308_v9  ;;  %v648_v57 = vrot.slane %v646_v51, 4  ;;  %v647_v2 = vsel %vm2656_vm11, %v638_v56, %v646_v51  ;;  %v687_v8 = vshrl.u32 %v655_v63, 16  ;;  %v2446_v56 = vld [vmem:[#allocation4 + $0xd8] sm:$0xff]  }
  0x42   :  { %v2045_v18 = vcombine.low %v299_v7, %v309_v17  ;;  %v471_v46 = vsel %vm2684_vm5, %v469_v27, %v470_v29  ;;  %vm650_vm4 = vcmp.ne.s16.totalorder %v647_v2, 0  ;;  %v690_v27 = vshll.u32 %v655_v63, 16 }
  0x43   :  { %2271 = vmatpush3.bf16.msra.mxu0 %v2430_v24  ;;  %v2056_v24 = vcombine.low %v461_v13, %v464_v20  ;;  %vm651_vm3 = vcmp.ne.s16.totalorder %v648_v57, 0  ;;  %v653_v9 = vsel %vm650_vm4, %v607_v52, 0  ;;  %v848_v57 = vld [vmem:[%s3161_s0] sm:$0x8]  ;;  %v879_v2 = vshrl.u32 %v2831_v59, 16 }
  0x44   :  { %2272 = vmatprep.subr.bf16.mxu0 %v2432_v53  ;;  %2261 = vmatmul.mubr.bf16.vlgmr.msra.gmra.mrb[0].mxu1 %v2045_v18  ;;  %v654_v6 = vsel %vm651_vm3, %v608_v47, 0  ;;  %v657_v7 = vsel %vm651_vm3, %v611_v54, 0  ;;  %v668_v17 = vshrl.u32 %v653_v9, 16  ;;  %v671_v18 = vshll.u32 %v653_v9, 16  ;;  %v2441_v47 = vld [vmem:[#allocation4 + $0xb0] sm:$0xff]  }
  0x45   :  { %2285 = vmatpush3.bf16.msra.mxu1 %v2622_v49  ;;  %2280 = vmatprep.mubr.bf16.mxu0 %v2056_v24  ;;  %v468_v49 = vsel %vm2684_vm5, %v2055_v25, %v467_v5  ;;  %v2442_v5 = vld [vmem:[#allocation4 + $0xc8] sm:$0xff]   ;;  %v681_v20 = vshll.u32 %v654_v6, 16  ;;  %v689_v25 = vrot.slane %v687_v8, 6  ;;  %vm872_vm3 = vsmask.f32 3328 }
  0x46   :  { %2286 = vmatprep.subr.bf16.mxu1 %v2431_v19  ;;  %v2057_v60 = vcombine.low %v468_v49, %v471_v46  ;;  %v670_v30 = vrot.slane %v668_v17, 6  ;;  %v673_v23 = vrot.slane %v671_v18, 7  ;;  %v692_v36 = vrot.slane %v690_v27, 7  ;;  %v2445_v27 = vld [vmem:[#allocation4 + $0x140] sm:$0xff]  }
  0x47   :  { %2273 = vmatpush3.bf16.msra.mxu0 %v2432_v53  ;;  %v610_v53 = vld [vmem:[%s3161_s0 + $0x14] sm:$0xf]  ;;  %v683_v32 = vrot.slane %v681_v20, 7  ;;  %v706_v43 = vshrl.u32 %v657_v7, 16  ;;  %v709_v44 = vshll.u32 %v657_v7, 16  ;;  %v881_v7 = vrot.slane %v879_v2, 4 }
  0x48   :  { %2274 = vmatprep.subr.bf16.mxu0 %v2434_v62  ;;  %v656_v13 = vsel %vm650_vm4, %v610_v53, 0  ;;  %v674_v40 = vor.u32 %v673_v23, %v670_v30  ;;  %v693_v45 = vor.u32 %v692_v36, %v689_v25  ;;  %vm2870_vm4 = vmand %vm2749_vm7, %vm618_vm0  ;;  %vm3217_vm0 = vcmp.lt.s32.totalorder %v2601_v33, 4  ;;  %v852_v30 = vld [vmem:[%s3161_s0 + $0x14] sm:$0xf] }
  0x49   :  { %2287 = vmatpush3.bf16.msra.mxu1 %v2431_v19  ;;  %v678_v19 = vshrl.u32 %v654_v6, 16  ;;  %v696_v29 = vshrl.u32 %v656_v13, 16  ;;  %v708_v52 = vrot.slane %v706_v43, 6  ;;  %v711_v53 = vrot.slane %v709_v44, 7  ;;  %vm2884_vm7 = vmand %vm2821_vm1, %vm3217_vm0  ;;  %v2443_v6 = vld [vmem:[#allocation4 + $0xb8] sm:$0xff]  }
  0x4a   :  { %2288 = vmatprep.subr.bf16.mxu1 %v2433_v26  ;;  %v676_v51 = vrot.slane %v674_v40, 4  ;;  %v694_v54 = vrot.slane %v693_v45, 4  ;;  %vm1098_vm12 = vmpackc.low %vm2870_vm4, %vm2870_vm4  ;;  %vm904_vm1 = vsmask.f32 4368  ;;  %vm3222_vm4 = vsmask.f32 256 }
  0x4b   :  { %2275 = vmatpush3.bf16.msra.mxu0 %v2434_v62  ;;  %v652_v62 = vsel %vm649_vm15, %v606_v22, 0  ;;  %vm869_vm15 = vmpackc.low %vm2847_vm13, %vm2847_vm13  ;;  %v698_v38 = vrot.slane %v696_v29, 6  ;;  %v2444_v22 = vld [vmem:[#allocation4 + $0xd0] sm:$0xff]   ;;  %v712_v63 = vor.u32 %v711_v53, %v708_v52  ;;  %v850_v29 = vld [vmem:[%s3161_s0 + $0x8] sm:$0xf] }
  0x4c   :  { %2276 = vmatprep.subr.bf16.mxu0 %v2436_v21  ;;  %v659_v3 = vshrl.u32 %v652_v62, 16  ;;  %v662_v4 = vshll.u32 %v652_v62, 16  ;;  %v871_v46 = vsel %vm869_vm15, 65537, %v2513_v35  ;;  %vm1099_vm15 = vmpackc.low %vm2884_vm7, %vm2884_vm7  ;;  %v2452_v52 = vld [vmem:[#allocation4 + $0xf0] sm:$0xff]  }
  0x4d   :  { %2289 = vmatpush3.bf16.msra.mxu1 %v2433_v26  ;;  %v680_v26 = vrot.slane %v678_v19, 6  ;;  %v889_v9 = vshrl.u32 %v871_v46, 16  ;;  %vm2900_vm0 = vmor %vm872_vm3, %vm873_vm9  ;;  %v849_v19 = vld [vmem:[%s3161_s0 + $0x4] sm:$0xf]  ;;  %v2925_v23 = vsel %vm1099_vm15, 65537, %v2513_v35 }
  0x4e   :  { %2290 = vmatprep.subr.bf16.mxu1 %v2435_v55  ;;  %v661_v15 = vrot.slane %v659_v3, 6  ;;  %v664_v16 = vrot.slane %v662_v4, 7  ;;  %v885_v3 = vshll.u32 %v871_v46, 16  ;;  %v1111_v43 = vshrl.u32 %v2925_v23, 16  ;;  %vm2938_vm7 = vmor %vm3222_vm4, %vm904_vm1 }
  0x4f   :  { %2277 = vmatpush3.bf16.msra.mxu0 %v2436_v21  ;;  %v2439_v21 = vld [vmem:[#allocation4 + $0xa8] sm:$0xff]   ;;  %v684_v41 = vor.u32 %v683_v32, %v680_v26  ;;  %v853_v26 = vld [vmem:[%s3161_s0 + $0x18] sm:$0xf]  ;;  %vm1332_vm15 = vmpackc.low %vm2739_vm10, %vm2739_vm10 }
  0x50   :  { %2278 = vmatprep.subr.bf16.mxu0 %v2438_v39  ;;  %v665_v24 = vor.u32 %v664_v16, %v661_v15  ;;  %v887_v8 = vrot.slane %v885_v3, 5  ;;  %v891_v15 = vrot.slane %v889_v9, 4  ;;  %vm1729_vm4 = vmpackc.low %vm2839_vm6, %vm2839_vm6 }
  0x51   :  { %2291 = vmatpush3.bf16.msra.mxu1 %v2435_v55  ;;  %v685_v62 = vsel %vm2626_vm2, %v676_v51, %v684_v41 }
  0x52   :  { %2292 = vmatprep.subr.bf16.mxu1 %v2437_v1  ;;  %v666_v34 = vrot.slane %v665_v24, 4  ;;  %v1100_v24 = vsel %vm1098_vm12, 65537, %v2513_v35 }
  0x53   :  { %2279 = vmatpush3.bf16.msra.mxu0 %v2438_v39  ;;  %v699_v39 = vshll.u32 %v656_v13, 16  ;;  %v1106_v41 = vshll.u32 %v1100_v24, 16 }
  0x54   :  { %2304 = vmatprep.subr.bf16.mxu0 %v2440_v61  ;;  %v675_v48 = vsel %vm2626_vm2, %v666_v34, %v674_v40  ;;  %v1103_v40 = vshrl.u32 %v1100_v24, 16 }
  0x55   :  { %v701_v49 = vrot.slane %v699_v39, 7  ;;  %2293 = vmatpush3.bf16.msra.mxu1 %v2437_v1  ;;  %v851_v1 = vld [vmem:[%s3161_s0 + $0x10] sm:$0x8]  ;;  %v2066_v4 = vcombine.low %v675_v48, %v685_v62  ;;  %v2447_v39 = vld [vmem:[#allocation4 + $0x148] sm:$0xff]  }
  0x56   :  { %2281 = vmatmul.mubr.bf16.vlgmr.msra.gmra.mrb[4].mxu0 %v2057_v60  ;;  %2294 = vmatprep.subr.bf16.mxu1 %v2439_v21  ;;  %v876_v60 = vshll.u32 %v2831_v59, 16  ;;  %v2448_v59 = vld [vmem:[#allocation4 + $0xe0] sm:$0xff]  }
  0x57   :  { %2305 = vmatpush3.bf16.msra.mxu0 %v2440_v61  ;;  %v702_v55 = vor.u32 %v701_v49, %v698_v38  ;;  %2300 = vmatprep.mubr.bf16.mxu1 %v2066_v4  ;;  %v1114_v49 = vshll.u32 %v2925_v23, 16 }
  0x58   :  { %2306 = vmatprep.subr.bf16.mxu0 %v2442_v5 }
  0x59   :  { %v704_v31 = vrot.slane %v702_v55, 4  ;;  %2295 = vmatpush3.bf16.msra.mxu1 %v2439_v21  ;;  %v703_v33 = vsel %vm2626_vm2, %v694_v54, %v702_v55  ;;  %v892_v21 = vor.u32 %v891_v15, %v887_v8  ;;  %v1087_v15 = vld [vmem:[%s3161_s0 + $0x14] sm:$0xf] }
  0x5a   :  { %2296 = vmatprep.subr.bf16.mxu1 %v2441_v47 }
  0x5b   :  { %2307 = vmatpush3.bf16.msra.mxu0 %v2442_v5  ;;  %v878_v5 = vrot.slane %v876_v60, 5  ;;  %v713_v0 = vsel %vm2626_vm2, %v704_v31, %v712_v63  ;;  %v893_v34 = vrot.slane %v892_v21, 4  ;;  %v1105_v63 = vrot.slane %v1103_v40, 7 }
  0x5c   :  { %2308 = vmatprep.subr.bf16.mxu0 %v2444_v22  ;;  %v2067_v25 = vcombine.low %v703_v33, %v713_v0  ;;  %v1113_v31 = vrot.slane %v1111_v43, 7 }
  0x5d   :  { %vm894_vm13 = vcmp.ne.s16.totalorder %v878_v5, 0  ;;  %v882_v13 = vor.u32 %v881_v7, %v878_v5  ;;  %2297 = vmatpush3.bf16.msra.mxu1 %v2441_v47  ;;  %vm896_vm9 = vcmp.ne.s16.totalorder %v893_v34, 0  ;;  %v1084_v7 = vld [vmem:[%s3161_s0 + $0x4] sm:$0xf]  ;;  %v1108_v9 = vor.u32 %v1106_v41, %v1105_v63 }
  0x5e   :  { %v897_v16 = vsel %vm894_vm13, %v848_v57, 0  ;;  %v900_v17 = vsel %vm894_vm13, %v851_v1, 0  ;;  %2298 = vmatprep.subr.bf16.mxu1 %v2443_v6  ;;  %v899_v46 = vsel %vm896_vm9, %v850_v29, 0  ;;  %v902_v47 = vsel %vm896_vm9, %v853_v26, 0  ;;  %v2449_v57 = vld [vmem:[#allocation4 + $0x150] sm:$0xff]   ;;  %v2451_v29 = vld [vmem:[#allocation4 + $0x158] sm:$0xff]   ;;  %vm1728_vm9 = vmpackc.low %vm2813_vm14, %vm2813_vm14 }
  0x5f   :  { %2309 = vmatpush3.bf16.msra.mxu0 %v2444_v22  ;;  %v907_v18 = vshrl.u32 %v897_v16, 16  ;;  %v883_v20 = vrot.slane %v882_v13, 4  ;;  %v929_v38 = vshrl.u32 %v900_v17, 16  ;;  %v2450_v22 = vld [vmem:[#allocation4 + $0xe8] sm:$0xff]   ;;  %v921_v53 = vshrl.u32 %v899_v46, 16 }
  0x60   :  { %2310 = vmatprep.subr.bf16.mxu0 %v2446_v56  ;;  %v924_v54 = vshll.u32 %v899_v46, 16  ;;  %v943_v61 = vshrl.u32 %v902_v47, 16  ;;  %v946_v62 = vshll.u32 %v902_v47, 16  ;;  %v1085_v13 = vld [vmem:[%s3161_s0 + $0x8] sm:$0xf]  ;;  %v1116_v24 = vor.u32 %v1114_v49, %v1113_v31 }
  0x61   :  { %v888_v32 = vsel %vm2900_vm0, %v883_v20, %v887_v8  ;;  %v2932_v36 = vrot.slane %v907_v18, 11  ;;  %2299 = vmatpush3.bf16.msra.mxu1 %v2443_v6  ;;  %v923_v2 = vrot.slane %v921_v53, 7  ;;  %v2077_v3 = vrot.slane %v929_v38, 11  ;;  %v1086_v8 = vld [vmem:[%s3161_s0 + $0xc] sm:$0x1] }
  0x62   :  { %vm895_vm3 = vcmp.ne.s16.totalorder %v888_v32, 0  ;;  %2324 = vmatprep.subr.bf16.mxu1 %v2445_v27  ;;  %v945_v6 = vrot.slane %v943_v61, 7  ;;  %v1088_v16 = vld [vmem:[%s3161_s0 + $0x18] sm:$0xf]  ;;  %v1089_v17 = vld [vmem:[%s3161_s0 + $0x1c] sm:$0x1] }
  0x63   :  { %2311 = vmatpush3.bf16.msra.mxu0 %v2446_v56  ;;  %v898_v44 = vsel %vm895_vm3, %v849_v19, 0  ;;  %v901_v45 = vsel %vm895_vm3, %v852_v30, 0  ;;  %v926_v33 = vor.u32 %v924_v54, %v923_v2  ;;  %v1109_v18 = vrot.slane %v1105_v63, 4  ;;  %v2454_v19 = vld [vmem:[#allocation4 + $0xf8] sm:$0xff]   ;;  %vm1333_vm3 = vmpackc.low %vm2765_vm8, %vm2765_vm8  ;;  %v2455_v2 = vld [vmem:[#allocation4 + $0x168] sm:$0xff]  }
  0x64   :  { %2312 = vmatprep.subr.bf16.mxu0 %v2448_v59  ;;  %v912_v48 = vshrl.u32 %v898_v44, 16  ;;  %v915_v51 = vshll.u32 %v898_v44, 16  ;;  %v934_v55 = vshrl.u32 %v901_v45, 16  ;;  %v937_v56 = vshll.u32 %v901_v45, 16  ;;  %2301 = vmatmul.mubr.bf16.vlgmr.msra.gmra.mrb[4].mxu1 %v2067_v25  ;;  %v2453_v44 = vld [vmem:[#allocation4 + $0x160] sm:$0xff]  }
  0x65   :  { %2325 = vmatpush3.bf16.msra.mxu1 %v2445_v27  ;;  %v948_v21 = vor.u32 %v946_v62, %v945_v6  ;;  %v1118_v25 = vrot.slane %v1113_v31, 4  ;;  %vm1119_vm12 = vcmp.ne.s16.totalorder %v1108_v9, 0  ;;  %v1117_v26 = vsel %vm2938_vm7, %v1109_v18, %v1116_v24 }
  0x66   :  { %v914_v60 = vrot.slane %v912_v48, 7  ;;  %v936_v4 = vrot.slane %v934_v55, 7  ;;  %2326 = vmatprep.subr.bf16.mxu1 %v2447_v39  ;;  %vm1120_vm1 = vcmp.ne.s16.totalorder %v1117_v26, 0  ;;  %v1122_v38 = vsel %vm1119_vm12, %v1084_v7, 0 }
  0x67   :  { %2313 = vmatpush3.bf16.msra.mxu0 %v2448_v59  ;;  %vm2969_vm13 = vcmp.ne.s16.totalorder %v1118_v25, 0  ;;  %v1125_v40 = vsel %vm1119_vm12, %v1087_v15, 0  ;;  %v1126_v41 = vsel %vm1120_vm1, %v1088_v16, 0  ;;  %v1129_v45 = vshrl.u32 %v1122_v38, 16  ;;  %v2462_v25 = vld [vmem:[#allocation4 + $0x198] sm:$0xff]  }
  0x68   :  { %2314 = vmatprep.subr.bf16.mxu0 %v2450_v22  ;;  %v917_v5 = vor.u32 %v915_v51, %v914_v60  ;;  %v919_v12 = vrot.slane %v914_v60, 4  ;;  %v939_v59 = vor.u32 %v937_v56, %v936_v4  ;;  %v941_v0 = vrot.slane %v936_v4, 4  ;;  %v2458_v51 = vld [vmem:[#allocation4 + $0x188] sm:$0xff]  }
  0x69   :  { %2327 = vmatpush3.bf16.msra.mxu1 %v2447_v39  ;;  %v1124_v39 = vsel %vm2969_vm13, %v1086_v8, 0  ;;  %v1127_v43 = vsel %vm2969_vm13, %v1089_v17, 0  ;;  %v1132_v49 = vshll.u32 %v1122_v38, 16  ;;  %v1166_v53 = vshrl.u32 %v1126_v41, 16  ;;  %v2457_v17 = vld [vmem:[#allocation4 + $0x170] sm:$0xff]  }
  0x6a   :  { %v918_v20 = vsel %vm2938_vm7, %v2932_v36, %v917_v5  ;;  %v927_v27 = vsel %vm2938_vm7, %v919_v12, %v926_v33  ;;  %2328 = vmatprep.subr.bf16.mxu1 %v2449_v57  ;;  %v940_v23 = vsel %vm2938_vm7, %v2077_v3, %v939_v59  ;;  %v949_v34 = vsel %vm2938_vm7, %v941_v0, %v948_v21  ;;  %v2456_v36 = vld [vmem:[#allocation4 + $0x180] sm:$0xff]   ;;  %v2460_v33 = vld [vmem:[#allocation4 + $0x190] sm:$0xff]  }
  0x6b   :  { %2315 = vmatpush3.bf16.msra.mxu0 %v2450_v22  ;;  %v2078_v30 = vcombine.low %v918_v20, %v927_v27  ;;  %v1123_v22 = vsel %vm1120_vm1, %v1085_v13, 0  ;;  %v2079_v48 = vcombine.low %v940_v23, %v949_v34  ;;  %v1153_v54 = vshrl.u32 %v1125_v40, 16  ;;  %v1313_v23 = vld [vmem:[%s3161_s0 + $0x14] sm:$0xe]  ;;  %v2459_v34 = vld [vmem:[#allocation4 + $0x178] sm:$0xff]  }
  0x6c   :  { %2316 = vmatprep.subr.bf16.mxu0 %v2452_v52  ;;  %v1138_v46 = vshll.u32 %v1123_v22, 16  ;;  %v1142_v47 = vshrl.u32 %v1123_v22, 16  ;;  %v1131_v55 = vrot.slane %v1129_v45, 4  ;;  %v1134_v56 = vrot.slane %v1132_v49, 5  ;;  %v2464_v22 = vld [vmem:[#allocation4 + $0x1a0] sm:$0xff]  }
  0x6d   :  { %2320 = vmatprep.mubr.bf16.mxu0 %v2078_v30  ;;  %2329 = vmatpush3.bf16.msra.mxu1 %v2449_v57  ;;  %v1172_v62 = vshll.u32 %v1127_v43, 16  ;;  %v1155_v63 = vrot.slane %v1153_v54, 4  ;;  %v1156_v1 = vshll.u32 %v1125_v40, 16  ;;  %v1168_v31 = vrot.slane %v1166_v53, 4  ;;  %v1310_v30 = vld [vmem:[%s3161_s0 + $0x4] sm:$0xe] }
  0x6e   :  { %2330 = vmatprep.subr.bf16.mxu1 %v2451_v29  ;;  %v1140_v60 = vrot.slane %v1138_v46, 5  ;;  %v1144_v61 = vrot.slane %v1142_v47, 4  ;;  %v1135_v3 = vor.u32 %v1134_v56, %v1131_v55  ;;  %v1162_v5 = vshll.u32 %v1126_v41, 16  ;;  %v1311_v41 = vld [vmem:[%s3161_s0 + $0x8] sm:$0xf] }
  0x6f   :  { %2317 = vmatpush3.bf16.msra.mxu0 %v2452_v52  ;;  %v1148_v52 = vshll.u32 %v1124_v39, 16  ;;  %v1158_v12 = vrot.slane %v1156_v1, 5  ;;  %v1334_v6 = vsel %vm1332_vm15, 65537, %v2513_v35  ;;  %v1335_v9 = vsel %vm1333_vm3, 65537, %v2513_v35  ;;  %v1312_v43 = vld [vmem:[%s3161_s0 + $0xc] sm:$0x3] }
  0x70   :  { %2318 = vmatprep.subr.bf16.mxu0 %v2454_v19  ;;  %v1145_v4 = vor.u32 %v1144_v61, %v1140_v60  ;;  %v1136_v11 = vrot.slane %v1135_v3, 4  ;;  %v1164_v8 = vrot.slane %v1162_v5, 5  ;;  %v1174_v0 = vrot.slane %v1172_v62, 5  ;;  %v3017_v45 = vld [vmem:[%s3161_s0 + $0x4] sm:$0xc]  ;;  %v2466_v62 = vld [vmem:[#allocation4 + $0x1a8] sm:$0xff]  }
  0x71   :  { %v1150_v57 = vrot.slane %v1148_v52, 5  ;;  %2331 = vmatpush3.bf16.msra.mxu1 %v2451_v29  ;;  %v1159_v59 = vor.u32 %v1158_v12, %v1155_v63  ;;  %v1337_v16 = vshrl.u32 %v1334_v6, 16  ;;  %v1340_v20 = vshll.u32 %v1334_v6, 16  ;;  %v1314_v49 = vld [vmem:[%s3161_s0 + $0x18] sm:$0xf]  ;;  %v2461_v55 = vld [vmem:[#allocation4 + $0x1c0] sm:$0xff]  }
  0x72   :  { %2332 = vmatprep.subr.bf16.mxu1 %v2453_v44  ;;  %v1146_v7 = vrot.slane %v1145_v4, 4  ;;  %v1141_v13 = vsel %vm2900_vm0, %v1136_v11, %v1140_v60  ;;  %v1169_v42 = vor.u32 %v1168_v31, %v1164_v8  ;;  %v1346_v21 = vshrl.u32 %v1335_v9, 16  ;;  %v3025_v47 = vld [vmem:[%s3161_s0 + $0x8] sm:$0xf] }
  0x73   :  { %2319 = vmatpush3.bf16.msra.mxu0 %v2454_v19  ;;  %v1160_v19 = vrot.slane %v1159_v59, 4  ;;  %v1339_v27 = vrot.slane %v1337_v16, 6  ;;  %v1349_v29 = vshll.u32 %v1335_v9, 16  ;;  %v1342_v26 = vrot.slane %v1340_v20, 7  ;;  %v1556_v16 = vld [vmem:[%s3161_s0 + $0xc] sm:$0x3] }
  0x74   :  { %2344 = vmatprep.subr.bf16.mxu0 %v2456_v36  ;;  %v1151_v15 = vsel %vm2900_vm0, %v1146_v7, %v1150_v57  ;;  %v1170_v24 = vrot.slane %v1169_v42, 4  ;;  %v1348_v32 = vrot.slane %v1346_v21, 6  ;;  %v2108_v54 = vrot.slane %v3017_v45, 10 }
  0x75   :  { %2333 = vmatpush3.bf16.msra.mxu1 %v2453_v44  ;;  %v2088_v18 = vcombine.low %v1141_v13, %v1151_v15  ;;  %v1351_v39 = vrot.slane %v1349_v29, 7  ;;  %v1343_v40 = vor.u32 %v1342_v26, %v1339_v27  ;;  %v1568_v1 = vrot.slane %v3025_v47, 6 }
  0x76   :  { %2321 = vmatmul.mubr.bf16.vlgmr.msra.gmra.mrb[8].mxu0 %v2079_v48  ;;  %2334 = vmatprep.subr.bf16.mxu1 %v2455_v2  ;;  %v1175_v38 = vsel %vm2900_vm0, %v1170_v24, %v1174_v0  ;;  %v1315_v48 = vld [vmem:[%s3161_s0 + $0x1c] sm:$0x3]  ;;  %vm2027_vm12 = vcmask 1024  }
  0x77   :  { %2345 = vmatpush3.bf16.msra.mxu0 %v2456_v36  ;;  %2340 = vmatprep.mubr.bf16.mxu1 %v2088_v18  ;;  %v1165_v36 = vsel %vm2900_vm0, %v1160_v19, %v1164_v8  ;;  %v1352_v44 = vor.u32 %v1351_v39, %v1348_v32  ;;  %v1344_v46 = vrot.slane %v1343_v40, 4  ;;  %vm1355_vm10 = vcmp.ne.s16.totalorder %v1343_v40, 0 }
  0x78   :  { %2346 = vmatprep.subr.bf16.mxu0 %v2458_v51  ;;  %v2089_v37 = vcombine.low %v1165_v36, %v1175_v38  ;;  %v1358_v52 = vsel %vm1355_vm10, %v1310_v30, 0  ;;  %v1361_v53 = vsel %vm1355_vm10, %v1313_v23, 0  ;;  %v2465_v30 = vld [vmem:[#allocation4 + $0x1d0] sm:$0xff]  }
  0x79   :  { %2335 = vmatpush3.bf16.msra.mxu1 %v2455_v2  ;;  %v1353_v56 = vsel %vm2626_vm2, %v1344_v46, %v1352_v44  ;;  %v1365_v60 = vshrl.u32 %v1358_v52, 16  ;;  %v1368_v61 = vshll.u32 %v1358_v52, 16  ;;  %v1393_v57 = vshrl.u32 %v1361_v53, 16  ;;  %v2463_v2 = vld [vmem:[#allocation4 + $0x1c8] sm:$0xff]   ;;  %v2467_v46 = vld [vmem:[#allocation4 + $0x1d8] sm:$0xff]  }
  0x7a   :  { %2336 = vmatprep.subr.bf16.mxu1 %v2457_v17  ;;  %vm1356_vm8 = vcmp.ne.s16.totalorder %v1353_v56, 0  ;;  %v1396_v63 = vshll.u32 %v1361_v53, 16  ;;  %v1558_v52 = vld [vmem:[%s3161_s0 + $0x18] sm:$0xf]  ;;  %v1731_v53 = vsel %vm1729_vm4, 65537, %v2513_v35 }
  0x7b   :  { %2347 = vmatpush3.bf16.msra.mxu0 %v2458_v51  ;;  %v1354_v51 = vrot.slane %v1352_v44, 4  ;;  %v1359_v3 = vsel %vm1356_vm8, %v1311_v41, 0  ;;  %v1362_v31 = vsel %vm1356_vm8, %v1314_v49, 0  ;;  %v1367_v12 = vrot.slane %v1365_v60, 5  ;;  %v1557_v60 = vld [vmem:[%s3161_s0 + $0x14] sm:$0xc] }
  0x7c   :  { %2348 = vmatprep.subr.bf16.mxu0 %v2460_v33  ;;  %v1370_v6 = vrot.slane %v1368_v61, 6  ;;  %v1374_v11 = vshrl.u32 %v1359_v3, 16  ;;  %v1377_v7 = vshll.u32 %v1359_v3, 16  ;;  %v1398_v59 = vrot.slane %v1396_v63, 6  ;;  %v1559_v3 = vld [vmem:[%s3161_s0 + $0x1c] sm:$0x3] }
  0x7d   :  { %2337 = vmatpush3.bf16.msra.mxu1 %v2457_v17  ;;  %vm1357_vm0 = vcmp.ne.s16.totalorder %v1354_v51, 0  ;;  %v1402_v42 = vshrl.u32 %v1362_v31, 16  ;;  %v2468_v17 = vld [vmem:[#allocation4 + $0x1b0] sm:$0xff]   ;;  %v1405_v21 = vshll.u32 %v1362_v31, 16  ;;  %v1571_v44 = vrot.slane %v1556_v16, 6 }
  0x7e   :  { %2338 = vmatprep.subr.bf16.mxu1 %v2459_v34  ;;  %v1360_v4 = vsel %vm1357_vm0, %v1312_v43, 0  ;;  %v1363_v5 = vsel %vm1357_vm0, %v1315_v48, 0  ;;  %v1371_v0 = vor.u32 %v1370_v6, %v1367_v12  ;;  %v1376_v13 = vrot.slane %v1374_v11, 5  ;;  %v2474_v11 = vld [vmem:[#allocation4 + $0x208] sm:$0xff]   ;;  %v1718_v16 = vld [vmem:[%s3161_s0 + $0x18] sm:$0xf] }
  0x7f   :  { %2349 = vmatpush3.bf16.msra.mxu0 %v2460_v33  ;;  %v1384_v8 = vshrl.u32 %v1360_v4, 16  ;;  %v1387_v9 = vshll.u32 %v1360_v4, 16  ;;  %v1395_v33 = vrot.slane %v1393_v57, 5  ;;  %v1379_v15 = vrot.slane %v1377_v7, 6  ;;  %v1714_v7 = vld [vmem:[%s3161_s0 + $0x4] sm:$0xc] }
  0x80   :  { %2350 = vmatprep.subr.bf16.mxu0 %v2462_v25  ;;  %v1372_v24 = vrot.slane %v1371_v0, 4  ;;  %v1404_v27 = vrot.slane %v1402_v42, 5  ;;  %v1412_v29 = vshrl.u32 %v1363_v5, 16  ;;  %v1407_v32 = vrot.slane %v1405_v21, 6  ;;  %v1716_v42 = vld [vmem:[%s3161_s0 + $0xc] sm:$0x7] }
  0x81   :  { %2339 = vmatpush3.bf16.msra.mxu1 %v2459_v34  ;;  %v1386_v18 = vrot.slane %v1384_v8, 5  ;;  %v1389_v19 = vrot.slane %v1387_v9, 6  ;;  %v1399_v20 = vor.u32 %v1398_v59, %v1395_v33  ;;  %v1415_v34 = vshll.u32 %v1363_v5, 16  ;;  %v1717_v8 = vld [vmem:[%s3161_s0 + $0x14] sm:$0xc]  ;;  %v2471_v33 = vld [vmem:[#allocation4 + $0x1e8] sm:$0xff]  }
  0x82   :  { %2364 = vmatprep.subr.bf16.mxu1 %v2461_v55  ;;  %v1414_v39 = vrot.slane %v1412_v29, 5  ;;  %v1408_v40 = vor.u32 %v1407_v32, %v1404_v27  ;;  %v1570_v43 = vrot.slane %v1568_v1, 4  ;;  %v1730_v49 = vsel %vm1728_vm9, 65537, %v2513_v35  ;;  %v2469_v35 = vld [vmem:[#allocation4 + $0x1e0] sm:$0xff]  }
  0x83   :  { %2351 = vmatpush3.bf16.msra.mxu0 %v2462_v25  ;;  %v1380_v25 = vor.u32 %v1379_v15, %v1376_v13  ;;  %v1390_v23 = vor.u32 %v1389_v19, %v1386_v18  ;;  %v1400_v26 = vrot.slane %v1399_v20, 4  ;;  %v1417_v41 = vrot.slane %v1415_v34, 6  ;;  %v1715_v13 = vld [vmem:[%s3161_s0 + $0x8] sm:$0xf]  ;;  %v1719_v19 = vld [vmem:[%s3161_s0 + $0x1c] sm:$0x7] }
  0x84   :  { %2352 = vmatprep.subr.bf16.mxu0 %v2464_v22  ;;  %2341 = vmatmul.mubr.bf16.vlgmr.msra.gmra.mrb[8].mxu1 %v2089_v37  ;;  %v1569_v37 = vsel %vm2684_vm5, %v2108_v54, %v1568_v1  ;;  %v1410_v14 = vrot.slane %v1408_v40, 4  ;;  %v1572_v45 = vsel %vm2684_vm5, %v1570_v43, %v1571_v44  ;;  %v1733_v61 = vshrl.u32 %v1730_v49, 16  ;;  %v2473_v34 = vld [vmem:[#allocation4 + $0x1f0] sm:$0xff]   ;;  %v2477_v44 = vld [vmem:[#allocation4 + $0x218] sm:$0xff]  }
  0x85   :  { %2365 = vmatpush3.bf16.msra.mxu1 %v2461_v55  ;;  %v1381_v36 = vsel %vm2656_vm11, %v1372_v24, %v1380_v25  ;;  %v1382_v38 = vrot.slane %v1380_v25, 4  ;;  %v1409_v48 = vsel %vm2656_vm11, %v1400_v26, %v1408_v40  ;;  %v1418_v51 = vor.u32 %v1417_v41, %v1414_v39  ;;  %v2472_v55 = vld [vmem:[#allocation4 + $0x200] sm:$0xff]   ;;  %v2476_v25 = vld [vmem:[#allocation4 + $0x210] sm:$0xff]  }
  0x86   :  { %2366 = vmatprep.subr.bf16.mxu1 %v2463_v2  ;;  %v2110_v56 = vcombine.low %v1569_v37, %v1572_v45  ;;  %v1736_v57 = vshll.u32 %v1730_v49, 16  ;;  %v1575_v63 = vrot.slane %v1558_v52, 6  ;;  %v1742_v1 = vshrl.u32 %v1731_v53, 16 }
  0x87   :  { %2353 = vmatpush3.bf16.msra.mxu0 %v2464_v22  ;;  %v2470_v22 = vld [vmem:[#allocation4 + $0x1b8] sm:$0xff]   ;;  %v1391_v58 = vsel %vm2656_vm11, %v1382_v38, %v1390_v23  ;;  %v1419_v54 = vsel %vm2656_vm11, %v1410_v14, %v1418_v51  ;;  %v1735_v4 = vrot.slane %v1733_v61, 5  ;;  %v2109_v5 = vrot.slane %v1557_v60, 10 }
  0x88   :  { %2354 = vmatprep.subr.bf16.mxu0 %v2466_v62  ;;  %v2098_v47 = vcombine.low %v1381_v36, %v1391_v58  ;;  %2380 = vmatprep.mubr.bf16.mxu1 %v2110_v56  ;;  %v1738_v31 = vrot.slane %v1736_v57, 6  ;;  %v1744_v12 = vrot.slane %v1742_v1, 5  ;;  %v1577_v59 = vrot.slane %v1575_v63, 4  ;;  %v2475_v51 = vld [vmem:[#allocation4 + $0x1f8] sm:$0xff]   ;;  %v2478_v57 = vld [vmem:[#allocation4 + $0x220] sm:$0xff]  }
  0x89   :  { %2367 = vmatpush3.bf16.msra.mxu1 %v2463_v2  ;;  %v1745_v2 = vshll.u32 %v1731_v53, 16  ;;  %v1578_v0 = vrot.slane %v1559_v3, 6  ;;  %v3085_v18 = vsel %vm2684_vm5, %v2109_v5, %v1575_v63 }
  0x8a   :  { %2368 = vmatprep.subr.bf16.mxu1 %v2465_v30  ;;  %2360 = vmatprep.mubr.bf16.mxu0 %v2098_v47  ;;  %v1739_v9 = vor.u32 %v1738_v31, %v1735_v4 }
  0x8b   :  { %2355 = vmatpush3.bf16.msra.mxu0 %v2466_v62  ;;  %v2099_v62 = vcombine.low %v1409_v48, %v1419_v54  ;;  %v1747_v6 = vrot.slane %v1745_v2, 6  ;;  %v3094_v26 = vsel %vm2684_vm5, %v1577_v59, %v1578_v0  ;;  %vm2009_vm5 = vcmask 254976  }
  0x8c   :  { %2356 = vmatprep.subr.bf16.mxu0 %v2468_v17  ;;  %vm1751_vm14 = vcmp.ne.s16.totalorder %v1739_v9, 0 }
  0x8d   :  { %2369 = vmatpush3.bf16.msra.mxu1 %v2465_v30  ;;  %v1748_v15 = vor.u32 %v1747_v6, %v1744_v12  ;;  %v1754_v21 = vsel %vm1751_vm14, %v1714_v7, 0  ;;  %v1757_v24 = vsel %vm1751_vm14, %v1717_v8, 0  ;;  %v2111_v12 = vcombine.low %v3085_v18, %v3094_v26 }
  0x8e   :  { %2370 = vmatprep.subr.bf16.mxu1 %v2467_v46  ;;  %v1761_v29 = vshrl.u32 %v1754_v21, 16  ;;  %v1764_v30 = vshll.u32 %v1754_v21, 16  ;;  %v1789_v23 = vshrl.u32 %v1757_v24, 16  ;;  %v1792_v32 = vshll.u32 %v1757_v24, 16 }
  0x8f   :  { %2357 = vmatpush3.bf16.msra.mxu0 %v2468_v17  ;;  %v1740_v17 = vrot.slane %v1739_v9, 4  ;;  %v1750_v20 = vrot.slane %v1748_v15, 4 }
  0x90   :  { %2358 = vmatprep.subr.bf16.mxu0 %v2470_v22  ;;  %v1763_v10 = vrot.slane %v1761_v29, 6  ;;  %v1766_v40 = vrot.slane %v1764_v30, 7  ;;  %v1791_v37 = vrot.slane %v1789_v23, 6  ;;  %v1794_v49 = vrot.slane %v1792_v32, 7 }
  0x91   :  { %2371 = vmatpush3.bf16.msra.mxu1 %v2467_v46  ;;  %v1749_v27 = vsel %vm2656_vm11, %v1740_v17, %v1748_v15  ;;  %vm1753_vm7 = vcmp.ne.s16.totalorder %v1750_v20, 0  ;;  %v2481_v15 = vld [vmem:[#allocation4 + $0x238] sm:$0xff]   ;;  %vm179_vm11 = vcmask 261120  }
  0x92   :  { %2372 = vmatprep.subr.bf16.mxu1 %v2469_v35  ;;  %vm1752_vm6 = vcmp.ne.s16.totalorder %v1749_v27, 0  ;;  %v1756_v38 = vsel %vm1753_vm7, %v1716_v42, 0  ;;  %v1767_v46 = vor.u32 %v1766_v40, %v1763_v10  ;;  %v1795_v53 = vor.u32 %v1794_v49, %v1791_v37 }
  0x93   :  { %2359 = vmatpush3.bf16.msra.mxu0 %v2470_v22  ;;  %v1755_v36 = vsel %vm1752_vm6, %v1715_v13, 0  ;;  %v1758_v39 = vsel %vm1752_vm6, %v1718_v16, 0  ;;  %v1759_v22 = vsel %vm1753_vm7, %v1719_v19, 0  ;;  %v1780_v58 = vshrl.u32 %v1756_v38, 16  ;;  %v2480_v13 = vld [vmem:[#allocation4 + $0x230] sm:$0xff]  }
  0x94   :  { %2384 = vmatprep.subr.bf16.mxu0 %v2472_v55  ;;  %v1770_v41 = vshrl.u32 %v1755_v36, 16  ;;  %v1773_v43 = vshll.u32 %v1755_v36, 16  ;;  %v1783_v28 = vshll.u32 %v1756_v38, 16  ;;  %v1798_v14 = vshrl.u32 %v1758_v39, 16 }
  0x95   :  { %2373 = vmatpush3.bf16.msra.mxu1 %v2469_v35  ;;  %v1782_v52 = vrot.slane %v1780_v58, 6  ;;  %v1801_v54 = vshll.u32 %v1758_v39, 16  ;;  %v1808_v61 = vshrl.u32 %v1759_v22, 16  ;;  %v1796_v63 = vrot.slane %v1795_v53, 4 }
  0x96   :  { %2361 = vmatmul.mubr.bf16.vlgmr.msra.gmra.mrb[12].mxu0 %v2099_v62  ;;  %2374 = vmatprep.subr.bf16.mxu1 %v2471_v33  ;;  %v1772_v47 = vrot.slane %v1770_v41, 6  ;;  %v1775_v48 = vrot.slane %v1773_v43, 7  ;;  %v1785_v45 = vrot.slane %v1783_v28, 7  ;;  %v1800_v60 = vrot.slane %v1798_v14, 6 }
  0x97   :  { %2385 = vmatpush3.bf16.msra.mxu0 %v2472_v55  ;;  %v1768_v55 = vrot.slane %v1767_v46, 4  ;;  %v1803_v1 = vrot.slane %v1801_v54, 7  ;;  %v1811_v2 = vshll.u32 %v1759_v22, 16  ;;  %v1810_v4 = vrot.slane %v1808_v61, 6 }
  0x98   :  { %2386 = vmatprep.subr.bf16.mxu0 %v2474_v11  ;;  %v1776_v56 = vor.u32 %v1775_v48, %v1772_v47  ;;  %v1786_v62 = vor.u32 %v1785_v45, %v1782_v52 }
  0x99   :  { %2375 = vmatpush3.bf16.msra.mxu1 %v2471_v33  ;;  %v1804_v31 = vor.u32 %v1803_v1, %v1800_v60  ;;  %v1813_v5 = vrot.slane %v1811_v2, 7 }
  0x9a   :  { %2376 = vmatprep.subr.bf16.mxu1 %v2473_v34  ;;  %v1777_v35 = vsel %vm2626_vm2, %v1768_v55, %v1776_v56  ;;  %v1778_v3 = vrot.slane %v1776_v56, 4 }
  0x9b   :  { %2387 = vmatpush3.bf16.msra.mxu0 %v2474_v11  ;;  %v2479_v11 = vld [vmem:[#allocation4 + $0x228] sm:$0xff]   ;;  %v1805_v8 = vsel %vm2626_vm2, %v1796_v63, %v1804_v31  ;;  %v1806_v9 = vrot.slane %v1804_v31, 4  ;;  %v1814_v33 = vor.u32 %v1813_v5, %v1810_v4 }
  0x9c   :  { %2388 = vmatprep.subr.bf16.mxu0 %v2476_v25  ;;  %v1787_v6 = vsel %vm2626_vm2, %v1778_v3, %v1786_v62 }
  0x9d   :  { %2377 = vmatpush3.bf16.msra.mxu1 %v2473_v34  ;;  %v2120_v7 = vcombine.low %v1777_v35, %v1787_v6  ;;  %v1815_v59 = vsel %vm2626_vm2, %v1806_v9, %v1814_v33  ;;  %vm2006_vm2 = vcmask 1041409  }
  0x9e   :  { %2378 = vmatprep.subr.bf16.mxu1 %v2475_v51  ;;  %v2121_v0 = vcombine.low %v1805_v8, %v1815_v59 }
  0x9f   :  { %2389 = vmatpush3.bf16.msra.mxu0 %v2476_v25  ;;  %2400 = vmatprep.mubr.bf16.mxu0 %v2120_v7 }
  0xa0   :  { %2390 = vmatprep.subr.bf16.mxu0 %v2477_v44 }
  0xa1   :  { %2379 = vmatpush3.bf16.msra.mxu1 %v2475_v51 }
  0xa3   :  { %2391 = vmatpush3.bf16.msra.mxu0 %v2477_v44 }
  0xa4   :  { %2392 = vmatprep.subr.bf16.mxu0 %v2478_v57  ;;  %2381 = vmatmul.mubr.bf16.vlgmr.msra.gmra.mrb[12].mxu1 %v2111_v12 }
  0xa7   :  { %2393 = vmatpush3.bf16.msra.mxu0 %v2478_v57 }
  0xa8   :  { %2394 = vmatprep.subr.bf16.mxu0 %v2479_v11 }
  0xab   :  { %2395 = vmatpush3.bf16.msra.mxu0 %v2479_v11 }
  0xac   :  { %2396 = vmatprep.subr.bf16.mxu0 %v2480_v13 }
  0xaf   :  { %2397 = vmatpush3.bf16.msra.mxu0 %v2480_v13 }
  0xb0   :  { %2398 = vmatprep.subr.bf16.mxu0 %v2481_v15 }
  0xb3   :  { %2399 = vmatpush3.bf16.msra.mxu0 %v2481_v15 }
  0xb6   :  { %2401 = vmatmul.mubr.bf16.vlgmr.msra.gmra.mrb[16].mxu0 %v2121_v0 }
 0x109   :  { %v2242_v42 = vpop.f32.mrb[0].mxu0 }
 0x10a   :  { %182 = vst.msk [vmem:[#allocation2 + $0x10] sm:$0xff] %vm179_vm11, %v2242_v42  ;;  %v164_v16 = vpop.f32.mrb[1].mxu0 }
 0x10b   :  { %180 = vst.msk [vmem:[#allocation2] sm:$0xff] %vm179_vm11, %v164_v16  ;;  %v2243_v50 = vpop.f32.mrb[2].mxu0 }
 0x10c   :  { %183 = vst.msk [vmem:[#allocation2 + $0x18] sm:$0xff] %vm179_vm11, %v2243_v50  ;;  %v167_v17 = vpop.f32.mrb[3].mxu0 }
 0x10d   :  { %181 = vst.msk [vmem:[#allocation2 + $0x8] sm:$0xff] %vm179_vm11, %v167_v17 }
 0x111   :  { %v186_v18 = vld [vmem:[#allocation2 + $0x10] sm:$0xff] }
 0x112   :  { %v184_v19 = vld [vmem:[#allocation2] sm:$0xff] }
 0x113   :  { %v187_v21 = vld [vmem:[#allocation2 + $0x18] sm:$0xff] }
 0x114   :  { %v185_v27 = vld [vmem:[#allocation2 + $0x8] sm:$0xff] }
 0x117   :  { %v2262_v20 = vpop.f32.mrb[0].mxu1 }
 0x118   :  { %v433_v24 = vadd.f32 %v2262_v20, %v186_v18  ;;  %v416_v25 = vpop.f32.mrb[1].mxu1 }
 0x119   :  { %v431_v29 = vadd.f32 %v416_v25, %v184_v19  ;;  %v2263_v30 = vpop.f32.mrb[2].mxu1 }
 0x11a   :  { %437 = vst.msk [vmem:[#allocation2 + $0x10] sm:$0xff] %vm179_vm11, %v433_v24  ;;  %v434_v23 = vadd.f32 %v2263_v30, %v187_v21  ;;  %v419_v26 = vpop.f32.mrb[3].mxu1 }
 0x11b   :  { %435 = vst.msk [vmem:[#allocation2] sm:$0xff] %vm179_vm11, %v431_v29  ;;  %v432_v32 = vadd.f32 %v419_v26, %v185_v27 }
 0x11c   :  { %438 = vst.msk [vmem:[#allocation2 + $0x18] sm:$0xff] %vm179_vm11, %v434_v23 }
 0x11d   :  { %436 = vst.msk [vmem:[#allocation2 + $0x8] sm:$0xff] %vm179_vm11, %v432_v32 }
 0x121   :  { %v441_v34 = vld [vmem:[#allocation2 + $0x10] sm:$0xff] }
 0x122   :  { %v439_v39 = vld [vmem:[#allocation2] sm:$0xff] }
 0x123   :  { %v442_v40 = vld [vmem:[#allocation2 + $0x18] sm:$0xff] }
 0x124   :  { %v440_v44 = vld [vmem:[#allocation2 + $0x8] sm:$0xff] }
 0x129   :  { %v2282_v36 = vpop.f32.mrb[4].mxu0 }
 0x12a   :  { %v596_v38 = vadd.f32 %v2282_v36, %v441_v34  ;;  %v579_v22 = vpop.f32.mrb[5].mxu0 }
 0x12b   :  { %v594_v10 = vadd.f32 %v579_v22, %v439_v39  ;;  %v2283_v41 = vpop.f32.mrb[6].mxu0 }
 0x12c   :  { %600 = vst.msk [vmem:[#allocation2 + $0x10] sm:$0xff] %vm179_vm11, %v596_v38  ;;  %v597_v43 = vadd.f32 %v2283_v41, %v442_v40  ;;  %v582_v58 = vpop.f32.mrb[7].mxu0 }
 0x12d   :  { %598 = vst.msk [vmem:[#allocation2] sm:$0xff] %vm179_vm11, %v594_v10  ;;  %v595_v28 = vadd.f32 %v582_v58, %v440_v44 }
 0x12e   :  { %601 = vst.msk [vmem:[#allocation2 + $0x18] sm:$0xff] %vm179_vm11, %v597_v43 }
 0x12f   :  { %599 = vst.msk [vmem:[#allocation2 + $0x8] sm:$0xff] %vm179_vm11, %v595_v28 }
 0x133   :  { %v604_v37 = vld [vmem:[#allocation2 + $0x10] sm:$0xff] }
 0x134   :  { %v602_v49 = vld [vmem:[#allocation2] sm:$0xff] }
 0x135   :  { %v605_v47 = vld [vmem:[#allocation2 + $0x18] sm:$0xff] }
 0x136   :  { %v603_v51 = vld [vmem:[#allocation2 + $0x8] sm:$0xff] }
 0x137   :  { %v2302_v46 = vpop.f32.mrb[4].mxu1 }
 0x138   :  { %v838_v48 = vadd.f32 %v2302_v46, %v604_v37  ;;  %v821_v14 = vpop.f32.mrb[5].mxu1 }
 0x139   :  { %v836_v52 = vadd.f32 %v821_v14, %v602_v49  ;;  %v2303_v45 = vpop.f32.mrb[6].mxu1 }
 0x13a   :  { %842 = vst.msk [vmem:[#allocation2 + $0x10] sm:$0xff] %vm179_vm11, %v838_v48  ;;  %v839_v53 = vadd.f32 %v2303_v45, %v605_v47  ;;  %v824_v54 = vpop.f32.mrb[7].mxu1  ;;  %v2130_v45 = vld [vmem:[%s3163_s2] ss:$0 sm:$0xff] }
 0x13b   :  { %840 = vst.msk [vmem:[#allocation2] sm:$0xff] %vm179_vm11, %v836_v52  ;;  %v837_v55 = vadd.f32 %v824_v54, %v603_v51  ;;  %v2131_v54 = vld [vmem:[%s3164_s3] ss:$0 sm:$0xff] }
 0x13c   :  { %843 = vst.msk [vmem:[#allocation2 + $0x18] sm:$0xff] %vm179_vm11, %v839_v53 }
 0x13d   :  { %841 = vst.msk [vmem:[#allocation2 + $0x8] sm:$0xff] %vm179_vm11, %v837_v55 }
 0x141   :  { %v846_v56 = vld [vmem:[#allocation2 + $0x10] sm:$0xff] }
 0x142   :  { %v844_v57 = vld [vmem:[#allocation2] sm:$0xff] }
 0x143   :  { %v847_v1 = vld [vmem:[#allocation2 + $0x18] sm:$0xff] }
 0x144   :  { %v845_v3 = vld [vmem:[#allocation2 + $0x8] sm:$0xff] }
 0x149   :  { %v2322_v60 = vpop.f32.mrb[8].mxu0 }
 0x14a   :  { %v1074_v61 = vadd.f32 %v2322_v60, %v846_v56  ;;  %v1057_v62 = vpop.f32.mrb[9].mxu0 }
 0x14b   :  { %v1072_v63 = vadd.f32 %v1057_v62, %v844_v57  ;;  %v2323_v2 = vpop.f32.mrb[10].mxu0 }
 0x14c   :  { %1078 = vst.msk [vmem:[#allocation2 + $0x10] sm:$0xff] %vm179_vm11, %v1074_v61  ;;  %v1075_v35 = vadd.f32 %v2323_v2, %v847_v1  ;;  %v1060_v4 = vpop.f32.mrb[11].mxu0 }
 0x14d   :  { %1076 = vst.msk [vmem:[#allocation2] sm:$0xff] %vm179_vm11, %v1072_v63  ;;  %v1073_v31 = vadd.f32 %v1060_v4, %v845_v3 }
 0x14e   :  { %1079 = vst.msk [vmem:[#allocation2 + $0x18] sm:$0xff] %vm179_vm11, %v1075_v35 }
 0x14f   :  { %1077 = vst.msk [vmem:[#allocation2 + $0x8] sm:$0xff] %vm179_vm11, %v1073_v31 }
 0x153   :  { %v1082_v5 = vld [vmem:[#allocation2 + $0x10] sm:$0xff] }
 0x154   :  { %v1080_v12 = vld [vmem:[#allocation2] sm:$0xff] }
 0x155   :  { %v1083_v11 = vld [vmem:[#allocation2 + $0x18] sm:$0xff] }
 0x156   :  { %v1081_v9 = vld [vmem:[#allocation2 + $0x8] sm:$0xff] }
 0x157   :  { %v2342_v6 = vpop.f32.mrb[8].mxu1 }
 0x158   :  { %v1300_v7 = vadd.f32 %v2342_v6, %v1082_v5  ;;  %v1283_v8 = vpop.f32.mrb[9].mxu1  ;;  %v1980_v5 = vld [vmem:[%s3165_s4] sm:$0xff] }
 0x159   :  { %v1298_v33 = vadd.f32 %v1283_v8, %v1080_v12  ;;  %v2343_v59 = vpop.f32.mrb[10].mxu1  ;;  %v1981_v8 = vld [vmem:[%s3165_s4 + $0x8] sm:$0xff] }
 0x15a   :  { %1304 = vst.msk [vmem:[#allocation2 + $0x10] sm:$0xff] %vm179_vm11, %v1300_v7  ;;  %v1301_v0 = vadd.f32 %v2343_v59, %v1083_v11  ;;  %v1286_v13 = vpop.f32.mrb[11].mxu1 }
 0x15b   :  { %1302 = vst.msk [vmem:[#allocation2] sm:$0xff] %vm179_vm11, %v1298_v33  ;;  %v1299_v15 = vadd.f32 %v1286_v13, %v1081_v9 }
 0x15c   :  { %1305 = vst.msk [vmem:[#allocation2 + $0x18] sm:$0xff] %vm179_vm11, %v1301_v0 }
 0x15d   :  { %1303 = vst.msk [vmem:[#allocation2 + $0x8] sm:$0xff] %vm179_vm11, %v1299_v15 }
 0x161   :  { %v1308_v42 = vld [vmem:[#allocation2 + $0x10] sm:$0xff] }
 0x162   :  { %v1306_v17 = vld [vmem:[#allocation2] sm:$0xff] }
 0x163   :  { %v1309_v20 = vld [vmem:[#allocation2 + $0x18] sm:$0xff] }
 0x164   :  { %v1307_v25 = vld [vmem:[#allocation2 + $0x8] sm:$0xff] }
 0x169   :  { %v2362_v16 = vpop.f32.mrb[12].mxu0 }
 0x16a   :  { %v1544_v50 = vadd.f32 %v2362_v16, %v1308_v42  ;;  %v1527_v18 = vpop.f32.mrb[13].mxu0 }
 0x16b   :  { %v1542_v19 = vadd.f32 %v1527_v18, %v1306_v17  ;;  %v2363_v21 = vpop.f32.mrb[14].mxu0 }
 0x16c   :  { %1548 = vst.msk [vmem:[#allocation2 + $0x10] sm:$0xff] %vm179_vm11, %v1544_v50  ;;  %v1545_v24 = vadd.f32 %v2363_v21, %v1309_v20  ;;  %v1530_v27 = vpop.f32.mrb[15].mxu0 }
 0x16d   :  { %1546 = vst.msk [vmem:[#allocation2] sm:$0xff] %vm179_vm11, %v1542_v19  ;;  %v1543_v29 = vadd.f32 %v1530_v27, %v1307_v25 }
 0x16e   :  { %1549 = vst.msk [vmem:[#allocation2 + $0x18] sm:$0xff] %vm179_vm11, %v1545_v24 }
 0x16f   :  { %1547 = vst.msk [vmem:[#allocation2 + $0x8] sm:$0xff] %vm179_vm11, %v1543_v29 }
 0x173   :  { %v1552_v30 = vld [vmem:[#allocation2 + $0x10] sm:$0xff] }
 0x174   :  { %v1550_v23 = vld [vmem:[#allocation2] sm:$0xff] }
 0x175   :  { %v1553_v32 = vld [vmem:[#allocation2 + $0x18] sm:$0xff] }
 0x176   :  { %v1551_v38 = vld [vmem:[#allocation2 + $0x8] sm:$0xff] }
 0x177   :  { %v2382_v26 = vpop.f32.mrb[12].mxu1 }
 0x178   :  { %v1704_v34 = vadd.f32 %v2382_v26, %v1552_v30  ;;  %v1687_v36 = vpop.f32.mrb[13].mxu1 }
 0x179   :  { %v1702_v39 = vadd.f32 %v1687_v36, %v1550_v23  ;;  %v2383_v22 = vpop.f32.mrb[14].mxu1 }
 0x17a   :  { %1708 = vst.msk [vmem:[#allocation2 + $0x10] sm:$0xff] %vm179_vm11, %v1704_v34  ;;  %v1705_v10 = vadd.f32 %v2383_v22, %v1553_v32  ;;  %v1690_v40 = vpop.f32.mrb[15].mxu1  ;;  %v2132_v22 = vld [vmem:[#allocation3] ss:$0 sm:$0xff] }
 0x17b   :  { %1706 = vst.msk [vmem:[#allocation2] sm:$0xff] %vm179_vm11, %v1702_v39  ;;  %v1703_v41 = vadd.f32 %v1690_v40, %v1551_v38 }
 0x17c   :  { %1709 = vst.msk [vmem:[#allocation2 + $0x18] sm:$0xff] %vm179_vm11, %v1705_v10 }
 0x17d   :  { %1707 = vst.msk [vmem:[#allocation2 + $0x8] sm:$0xff] %vm179_vm11, %v1703_v41 }
 0x181   :  { %v1712_v43 = vld [vmem:[#allocation2 + $0x10] sm:$0xff] }
 0x182   :  { %v1710_v28 = vld [vmem:[#allocation2] sm:$0xff] }
 0x183   :  { %v1713_v46 = vld [vmem:[#allocation2 + $0x18] sm:$0xff] }
 0x184   :  { %v1711_v14 = vld [vmem:[#allocation2 + $0x8] sm:$0xff] }
 0x189   :  { %v2402_v44 = vpop.f32.mrb[16].mxu0 }
 0x18a   :  { %v1940_v58 = vadd.f32 %v2402_v44, %v1712_v43  ;;  %v1923_v37 = vpop.f32.mrb[17].mxu0 }
 0x18b   :  { %v1938_v49 = vadd.f32 %v1923_v37, %v1710_v28  ;;  %v2403_v47 = vpop.f32.mrb[18].mxu0 }
 0x18c   :  { %1944 = vst.msk [vmem:[#allocation2 + $0x10] sm:$0xff] %vm179_vm11, %v1940_v58  ;;  %v1941_v48 = vadd.f32 %v2403_v47, %v1713_v46  ;;  %v1926_v51 = vpop.f32.mrb[19].mxu0 }
 0x18d   :  { %1942 = vst.msk [vmem:[#allocation2] sm:$0xff] %vm179_vm11, %v1938_v49  ;;  %v1939_v52 = vadd.f32 %v1926_v51, %v1711_v14 }
 0x18e   :  { %1945 = vst.msk [vmem:[#allocation2 + $0x18] sm:$0xff] %vm179_vm11, %v1941_v48 }
 0x18f   :  { %1943 = vst.msk [vmem:[#allocation2 + $0x8] sm:$0xff] %vm179_vm11, %v1939_v52 }
 0x193   :  { %v1948_v53 = vld [vmem:[#allocation2 + $0x10] sm:$0xff] }
 0x194   :  { %v1946_v55 = vld [vmem:[#allocation2] sm:$0xff]  ;;  %v1959_v56 = vmul.f32 %v2130_v45, %v1948_v53 }
 0x195   :  { %v1949_v60 = vld [vmem:[#allocation2 + $0x18] sm:$0xff]  ;;  %v1957_v61 = vmul.f32 %v2130_v45, %v1946_v55 }
 0x196   :  { %v1947_v57 = vld [vmem:[#allocation2 + $0x8] sm:$0xff]  ;;  %v1960_v62 = vmul.f32 %v2130_v45, %v1949_v60  ;;  %v1970_v63 = vadd.f32 %v2131_v54, %v1959_v56 }
 0x197   :  { %v1958_v1 = vmul.f32 %v2130_v45, %v1947_v57  ;;  %v1968_v2 = vadd.f32 %v2131_v54, %v1957_v61 }
 0x198   :  { %v1971_v35 = vadd.f32 %v2131_v54, %v1960_v62  ;;  %v1974_v3 = vmul.f32 0.2, %v1970_v63 }
 0x199   :  { %v1969_v4 = vadd.f32 %v2131_v54, %v1958_v1  ;;  %v1972_v31 = vmul.f32 0.2, %v1968_v2 }
 0x19a   :  { %v1975_v12 = vmul.f32 0.2, %v1971_v35  ;;  %v1978_v6 = vmax.f32 %v1970_v63, %v1974_v3 }
 0x19b   :  { %v1973_v11 = vmul.f32 0.2, %v1969_v4  ;;  %v1976_v7 = vmax.f32 %v1968_v2, %v1972_v31 }
 0x19c   :  { %v1979_v9 = vmax.f32 %v1971_v35, %v1975_v12  ;;  %v1984_v33 = vmul.f32 %v1980_v5, %v1978_v6 }
 0x19d   :  { %v1977_v59 = vmax.f32 %v1969_v4, %v1973_v11  ;;  %v1982_v0 = vmul.f32 %v1980_v5, %v1976_v7 }
 0x19e   :  { %v1985_v13 = vmul.f32 %v1981_v8, %v1979_v9  ;;  %v1995_v42 = vsel %vm179_vm11, %v1984_v33, 0.0 }
 0x19f   :  { %v1983_v15 = vmul.f32 %v1981_v8, %v1977_v59  ;;  %v1986_v50 = vsel %vm179_vm11, %v1982_v0, 0.0 }
 0x1a0   :  { %v1996_v16 = vsel %vm179_vm11, %v1985_v13, 0.0 }
 0x1a1   :  { %v1987_v17 = vsel %vm179_vm11, %v1983_v15, 0.0  ;;  %v1997_v18 = vadd.f32 %v1996_v16, %v1995_v42 }
 0x1a2   :  { %v1988_v19 = vadd.f32 %v1987_v17, %v1986_v50 }
 0x1a3   :  { %v1998_v20 = vrot.slane %v1997_v18, 4 }
 0x1a4   :  { %v1989_v21 = vrot.slane %v1988_v19, 4 }
 0x1a5   :  { %v1999_v24 = vadd.f32 %v1998_v20, %v1997_v18 }
 0x1a6   :  { %v1990_v25 = vadd.f32 %v1989_v21, %v1988_v19 }
 0x1a7   :  { %v2000_v27 = vrot.slane %v1999_v24, 2 }
 0x1a8   :  { %v1991_v29 = vrot.slane %v1990_v25, 2 }
 0x1a9   :  { %v2001_v30 = vadd.f32 %v2000_v27, %v1999_v24 }
 0x1aa   :  { %v1992_v23 = vadd.f32 %v1991_v29, %v1990_v25 }
 0x1ab   :  { %v2002_v26 = vrot.slane %v2001_v30, 1 }
 0x1ac   :  { %v1993_v32 = vrot.slane %v1992_v23, 1 }
 0x1ad   :  { %v2003_v34 = vadd.f32 %v2002_v26, %v2001_v30 }
 0x1ae   :  { %v1994_v36 = vadd.f32 %v1993_v32, %v1992_v23 }
 0x1b0   :  { %v2007_v38 = vsel %vm2006_vm2, %v2003_v34, %v1994_v36 }
 0x1b1   :  { %v2010_v39 = vsel %vm2009_vm5, %v2007_v38, 0.0 }
 0x1b2   :  { %2011 = vadd.xlane.f32.xlu0 %v2010_v39 }
 0x23f   :  { %v2012_v10 = vpop.xlane.xlu0 %2011 }
 0x240   :  { %v2020_v40 = vadd.f32 %v2132_v22, %v2012_v10 }
 0x242   :  { %v2133_v41 = vmul.f32 -1.442695, %v2020_v40 }
 0x244   :  { %2482 = vpow2.f32 %v2133_v41 }
 0x24e   :  { %v2483_v43 = vpop.eup %2482 }
 0x24f   :  { %v2024_v44 = vadd.f32 1.0, %v2483_v43 }
 0x251   :  { %2484 = vrcp.f32 %v2024_v44 }
 0x25b   :  { %v2485_v58 = vpop.eup %2484 }
 0x25c   :  { %2028 = vst.msk [vmem:[%s3167_s6] sm:$0x3] %vm2027_vm12, %v2485_v58 }
 0x25d   :  { %2033 = vsyncpa [#allocation5], 1 }

</bundles_post_ra>
